<compile_context>
chip_gen: v5e
topology: v5e:2x2
jax: 0.10.0
libtpu: 0.0.40
codegen_flags: <defaults>
</compile_context>

<pallas_src>
import functools

import numpy as np
import jax
import jax.numpy as jnp
from jax import lax
from jax.experimental import pallas as pl
from jax.experimental.pallas import tpu as pltpu

LANE = 128
H0, H1, H2 = 384, 256, 16          # hidden_dims of the PyTorch module
EPS = 1e-5                         # BatchNorm1d eps
NEG_BIG = -1e30                    # finite "-inf" for masked max


def _round_up(n, m):
    return ((n + m - 1) // m) * m


def _cdiv(a, b):
    return -(-a // b)


# --------------------------- shared head math --------------------------------
def _apply_heads(dec, sig_mask, group_masks, num_groups, *, use_recip):
    """sigmoid on masked cols, per-group masked softmax; raw elsewhere.

    Single exp pass + two tiny matmuls (O(1) in group count).  `use_recip=True`
    uses the EUP approx reciprocal (kernel); False uses exact divide (refs).
    """
    if use_recip:
        recip = lambda v: pl.reciprocal(v, approx=True)
    else:
        recip = lambda v: 1.0 / v

    sig_m = sig_mask > 0.5                                        # (1, D)
    union_m = jnp.sum(group_masks, axis=0, keepdims=True) > 0.5   # (1, D)

    # Per-column max of its own softmax group (0 elsewhere). Small static loop:
    # one XLU reduce + one VPU mul/add per group; exp happens only once below.
    colmax = jnp.zeros_like(dec)
    for g in range(num_groups):
        m = group_masks[g:g + 1, :]
        mg = jnp.max(jnp.where(m > 0.5, dec, NEG_BIG), axis=-1, keepdims=True)
        colmax = colmax + m * mg

    # Single exp: exp(-dec) on sigmoid cols, exp(dec - groupmax) on softmax
    # cols, exp(0) elsewhere (unused). Clamp avoids inf*0 in the matmuls below.
    arg = jnp.where(sig_m, -dec, jnp.where(union_m, dec - colmax, 0.0))
    e = jnp.exp(jnp.minimum(arg, 80.0))

    # Per-group sums: sums[:, g] = sum_j e[:, j] * mask[g, j]; then scatter the
    # group sum back to its columns.  Both are tiny MXU matmuls.
    sums = lax.dot_general(e, group_masks, (((1,), (1,)), ((), ())),
                           preferred_element_type=jnp.float32)      # (B, G)
    denom = jnp.dot(sums, group_masks,
                    preferred_element_type=jnp.float32)             # (B, D)

    proc = jnp.where(sig_m, recip(1.0 + e), dec)
    proc = jnp.where(union_m, e * recip(denom), proc)
    return proc


# ----------------------------- Pallas kernel ---------------------------------
def _mlp_kernel(num_groups,
                x_ref,
                w1_ref, b1_ref, w2_ref, b2_ref, w3_ref, b3_ref,
                w4_ref, b4_ref, w5_ref, b5_ref, w6_ref, b6_ref,
                sig_ref, gmask_ref,
                dec_ref, enc_ref):
    f32, bf16 = jnp.float32, jnp.bfloat16
    x = x_ref[...]                                      # already bf16

    def layer(a, w_ref, b_ref):
        h = jnp.dot(a, w_ref[...], preferred_element_type=f32) + b_ref[...]
        return jnp.maximum(h, 0.0).astype(bf16)         # ReLU fused with cast

    # ----- encoder ----- (eval-mode BN folded into the following Linear)
    h = layer(x, w1_ref, b1_ref)
    h = layer(h, w2_ref, b2_ref)
    z = layer(h, w3_ref, b3_ref)                        # encoded, (TB, 128) bf16
    enc_ref[...] = z

    # ----- decoder -----
    d = layer(z, w4_ref, b4_ref)
    d = layer(d, w5_ref, b5_ref)
    dec = jnp.dot(d, w6_ref[...], preferred_element_type=f32) + b6_ref[...]

    # ----- head epilogue (sigmoid / per-group softmax), single exp pass -----
    dec_ref[...] = _apply_heads(dec, sig_ref[...], gmask_ref[...], num_groups,
                                use_recip=True)


# -------------------- parameter fold / pad / cast (host) ---------------------
def fold_and_pack_params(params, input_dim):
    """Fold eval-mode BN into the next Linear, zero-pad lane-dense, cast bf16."""
    Dp = _round_up(input_dim, LANE)
    Ep = _round_up(H2, LANE)

    def fold_into_next(s, t, w, b):
        # (relu(h)*s + t) @ W + b == relu(h) @ (s.T * W) + (t @ W + b)
        return s.reshape(-1, 1) * w, t @ w + b

    w1, b1 = params["w1"], params["b1"]
    w2, b2 = fold_into_next(params["s1"], params["t1"], params["w2"], params["b2"])
    w3, b3 = fold_into_next(params["s2"], params["t2"], params["w3"], params["b3"])
    w4, b4 = params["w4"], params["b4"]
    w5, b5 = fold_into_next(params["s3"], params["t3"], params["w5"], params["b5"])
    w6, b6 = fold_into_next(params["s4"], params["t4"], params["w6"], params["b6"])

    # zero-padding keeps the math exact (padded rows/cols contribute 0)
    w1 = jnp.zeros((Dp, H0), jnp.float32).at[:input_dim, :].set(w1)
    w3 = jnp.zeros((H1, Ep), jnp.float32).at[:, :H2].set(w3)
    b3 = jnp.zeros((1, Ep), jnp.float32).at[:, :H2].set(b3)
    w4 = jnp.zeros((Ep, H1), jnp.float32).at[:H2, :].set(w4)
    w6 = jnp.zeros((H0, Dp), jnp.float32).at[:, :input_dim].set(w6)
    b6 = jnp.zeros((1, Dp), jnp.float32).at[:, :input_dim].set(b6)

    bf = jnp.bfloat16
    return dict(
        w1=w1.astype(bf), b1=b1, w2=w2.astype(bf), b2=b2,
        w3=w3.astype(bf), b3=b3, w4=w4.astype(bf), b4=b4,
        w5=w5.astype(bf), b5=b5, w6=w6.astype(bf), b6=b6,
    )


def build_head_masks(input_dim, ordinal_idx, single_idx, multi_groups):
    """Column masks (arbitrary index lists supported) for the in-kernel heads."""
    Dp = _round_up(input_dim, LANE)
    sig = np.zeros((1, Dp), np.float32)
    for i in list(ordinal_idx) + list(single_idx):
        sig[0, i] = 1.0
    names = list(multi_groups.keys())
    n_groups = len(names)
    Gp = max(8, _round_up(max(n_groups, 1), 8))
    gm = np.zeros((Gp, Dp), np.float32)
    for g, name in enumerate(names):
        for i in multi_groups[name]:
            gm[g, i] = 1.0
    return jnp.asarray(sig), jnp.asarray(gm), n_groups


# ------------------------------ forward wrapper -------------------------------
def _choose_batch_tile(B, block_b):
    """Pick the batch tile from B itself (low padding waste), rounded to 16
    rows (bf16 sublane pack); force >=2 grid steps for large B so both v7x
    TensorCores get work (no-op on single-TC v5e/v6e)."""
    n_tiles = _cdiv(B, block_b)
    if B >= 512:
        n_tiles = max(n_tiles, 2)
    return _round_up(_cdiv(B, n_tiles), 16)


def mixed_autoencoder_forward(x, packed, sig_mask, group_masks, *,
                              num_groups, block_b=1024):
    B, D = x.shape
    Dp = packed["w1"].shape[0]
    Ep = packed["w3"].shape[1]
    TB = _choose_batch_tile(B, block_b)
    Bp = _round_up(B, TB)

    # Pad and cast in one pass: input DMA is half the bytes of f32.
    x_pad = jnp.zeros((Bp, Dp), jnp.bfloat16).at[:B, :D].set(
        x.astype(jnp.bfloat16))

    weight_inputs = (
        packed["w1"], packed["b1"], packed["w2"], packed["b2"],
        packed["w3"], packed["b3"], packed["w4"], packed["b4"],
        packed["w5"], packed["b5"], packed["w6"], packed["b6"],
        sig_mask, group_masks,
    )

    def const_spec(a):
        return pl.BlockSpec(a.shape, lambda i: (0,) * a.ndim)

    in_specs = ([pl.BlockSpec((TB, Dp), lambda i: (i, 0))] +
                [const_spec(a) for a in weight_inputs])

    out_shape = (
        jax.ShapeDtypeStruct((Bp, Dp), jnp.float32),     # processed decoded
        jax.ShapeDtypeStruct((Bp, Ep), jnp.bfloat16),    # encoded (padded)
    )
    out_specs = (
        pl.BlockSpec((TB, Dp), lambda i: (i, 0)),
        pl.BlockSpec((TB, Ep), lambda i: (i, 0)),
    )

    decoded_p, encoded_p = pl.pallas_call(
        functools.partial(_mlp_kernel, num_groups),
        grid=(Bp // TB,),
        in_specs=in_specs,
        out_specs=out_specs,
        out_shape=out_shape,
        compiler_params=pltpu.CompilerParams(
            dimension_semantics=("parallel",),            # megacore split
            vmem_limit_bytes=48 * 1024 * 1024,            # safe on v7x (64 MiB)
        ),
    )(x_pad, *weight_inputs)

    return decoded_p[:B, :D], encoded_p[:B, :H2].astype(jnp.float32)


# ------------------------ parameter initialization ----------------------------
def init_params(key, input_dim, hidden_dims=(H0, H1, H2)):
    h0, h1, h2 = hidden_dims
    dims = [(input_dim, h0), (h0, h1), (h1, h2), (h2, h1), (h1, h0), (h0, input_dim)]
    n_lin = len(dims)
    keys = jax.random.split(key, 2 * n_lin + 4 * 4)
    params = {}

    def linear(kw, kb, fan_in, fan_out):
        bound = 1.0 / np.sqrt(fan_in)
        w = jax.random.uniform(kw, (fan_in, fan_out), jnp.float32, -bound, bound)
        b = jax.random.uniform(kb, (1, fan_out), jnp.float32, -bound, bound)
        return w, b

    for i, (fi, fo) in enumerate(dims, start=1):
        w, b = linear(keys[2 * (i - 1)], keys[2 * (i - 1) + 1], fi, fo)
        params[f"w{i}"], params[f"b{i}"] = w, b

    # BatchNorm1d (eval): y = gamma*(h-mean)/sqrt(var+eps)+beta, stored as
    # scale = gamma/sqrt(var+eps), shift = beta - mean*scale.
    bn_sizes = {"1": h0, "2": h1, "3": h1, "4": h0}
    k = 2 * n_lin
    for name, n in bn_sizes.items():
        kg, kb_, km, kv = keys[k:k + 4]
        k += 4
        gamma = jax.random.uniform(kg, (1, n), jnp.float32, 0.8, 1.2)
        beta = jax.random.uniform(kb_, (1, n), jnp.float32, -0.1, 0.1)
        mean = jax.random.uniform(km, (1, n), jnp.float32, -0.1, 0.1)
        var = jax.random.uniform(kv, (1, n), jnp.float32, 0.8, 1.2)
        scale = gamma / jnp.sqrt(var + EPS)
        params[f"s{name}"] = scale
        params[f"t{name}"] = beta - mean * scale
    return params


# ----------------------------- output dict glue --------------------------------
def build_outputs(decoded_processed, cont_idx, ord_idx, single_idx, multi_groups):
    # Activations (sigmoid/softmax) were already applied inside the kernel;
    # this is pure column slicing to match the PyTorch output dict.
    return {
        "continuous": decoded_processed[:, jnp.asarray(cont_idx, jnp.int32)],
        "ordinal": decoded_processed[:, jnp.asarray(ord_idx, jnp.int32)],
        "single_ohe": (decoded_processed[:, jnp.asarray(single_idx, jnp.int32)]
                       if len(single_idx) else None),
        "multi_ohe": {g: decoded_processed[:, jnp.asarray(idx, jnp.int32)]
                      for g, idx in multi_groups.items()},
    }


# ------------------------------- references ------------------------------------
def reference_f32(x, p):
    """Eval-mode module math in plain f32 (unfolded BN, raw decoded)."""
    h = jnp.maximum(x @ p["w1"] + p["b1"], 0.0) * p["s1"] + p["t1"]
    h = jnp.maximum(h @ p["w2"] + p["b2"], 0.0) * p["s2"] + p["t2"]
    z = jnp.maximum(h @ p["w3"] + p["b3"], 0.0)
    d = jnp.maximum(z @ p["w4"] + p["b4"], 0.0) * p["s3"] + p["t3"]
    d = jnp.maximum(d @ p["w5"] + p["b5"], 0.0) * p["s4"] + p["t4"]
    return d @ p["w6"] + p["b6"], z


def reference_packed(x, packed, sig_mask, group_masks, num_groups, input_dim):
    """Same folded/padded/bf16 math as the kernel, via XLA (tight check)."""
    bf = jnp.bfloat16
    Dp = packed["w1"].shape[0]
    xp = jnp.zeros((x.shape[0], Dp), bf).at[:, :input_dim].set(x.astype(bf))

    def layer(a, w, b):
        h = jnp.dot(a, w, preferred_element_type=jnp.float32) + b
        return jnp.maximum(h, 0.0).astype(bf)

    h = layer(xp, packed["w1"], packed["b1"])
    h = layer(h, packed["w2"], packed["b2"])
    z = layer(h, packed["w3"], packed["b3"])
    d = layer(z, packed["w4"], packed["b4"])
    d = layer(d, packed["w5"], packed["b5"])
    dec = jnp.dot(d, packed["w6"], preferred_element_type=jnp.float32) + packed["b6"]
    proc = _apply_heads(dec, sig_mask, group_masks, num_groups, use_recip=False)
    return proc[:, :input_dim], z[:, :H2].astype(jnp.float32)


# ------------------------------------ main --------------------------------------
if __name__ == "__main__":
    # Small synthetic schema consistent with the module's column groups.
    B = 8
    INPUT_DIM = 64
    continuous_idx = list(range(0, 10))
    ordinal_idx = list(range(10, 30))
    single_col_idx = list(range(30, 40))
    multi_col_groups = {"g1": list(range(40, 48)), "g2": list(range(48, 64))}

    key = jax.random.PRNGKey(0)
    kx, kp, kx2 = jax.random.split(key, 3)
    x = jax.random.normal(kx, (B, INPUT_DIM), jnp.float32)
    params = init_params(kp, INPUT_DIM)

    packed = fold_and_pack_params(params, INPUT_DIM)
    sig_mask, group_masks, n_groups = build_head_masks(
        INPUT_DIM, ordinal_idx, single_col_idx, multi_col_groups)

    fwd = jax.jit(functools.partial(mixed_autoencoder_forward,
                                    num_groups=n_groups))
    decoded, encoded = fwd(x, packed, sig_mask, group_masks)
    decoded = jax.block_until_ready(decoded)
    encoded = jax.block_until_ready(encoded)

    # Tight check vs. identical folded/bf16 math computed by XLA (approx-recip
    # epilogue in the kernel vs exact divide in the reference -> small slack).
    ref_dec_bf, ref_enc_bf = reference_packed(
        x, packed, sig_mask, group_masks, n_groups, INPUT_DIM)
    assert jnp.allclose(decoded, ref_dec_bf, atol=5e-3, rtol=5e-3)
    assert jnp.allclose(encoded, ref_enc_bf, atol=2e-2, rtol=2e-2)

    # Loose check vs. full-f32 unfolded eval-mode module math (bf16 MXU error).
    ref_dec_f32, ref_enc_f32 = reference_f32(x, params)
    ref_proc_f32 = _apply_heads(ref_dec_f32,
                                sig_mask[:, :INPUT_DIM],
                                group_masks[:, :INPUT_DIM], n_groups,
                                use_recip=False)
    assert jnp.allclose(decoded, ref_proc_f32, atol=5e-2, rtol=5e-2)
    assert jnp.allclose(encoded, ref_enc_f32, atol=5e-2, rtol=5e-2)

    # Output dict (matches the PyTorch forward's outputs).
    outputs = build_outputs(decoded, continuous_idx, ordinal_idx,
                            single_col_idx, multi_col_groups)
    jax.block_until_ready(outputs["multi_ohe"]["g2"])

    assert outputs["continuous"].shape == (B, len(continuous_idx))
    assert outputs["ordinal"].shape == (B, len(ordinal_idx))
    assert outputs["single_ohe"].shape == (B, len(single_col_idx))
    assert outputs["multi_ohe"]["g1"].shape == (B, 8)
    assert outputs["multi_ohe"]["g2"].shape == (B, 16)
    # softmax rows sum to 1 (approx-recip leaves ~1e-3 slack)
    assert jnp.allclose(outputs["multi_ohe"]["g1"].sum(axis=1), 1.0, atol=3e-3)
    assert encoded.shape == (B, H2)

    # Multi-tile grid path (grid = 3 with a padded last tile).
    B2 = 40
    x2 = jax.random.normal(kx2, (B2, INPUT_DIM), jnp.float32)
    fwd2 = jax.jit(functools.partial(mixed_autoencoder_forward,
                                     num_groups=n_groups, block_b=16))
    dec2, enc2 = fwd2(x2, packed, sig_mask, group_masks)
    dec2 = jax.block_until_ready(dec2)
    enc2 = jax.block_until_ready(enc2)
    ref2_dec, ref2_enc = reference_packed(
        x2, packed, sig_mask, group_masks, n_groups, INPUT_DIM)
    assert jnp.allclose(dec2, ref2_dec, atol=5e-3, rtol=5e-3)
    assert jnp.allclose(enc2, ref2_enc, atol=2e-2, rtol=2e-2)

    # TODO(synk): training-mode input noise / clamping and Dropout(0.2) are
    # identity in eval mode and intentionally not implemented in the kernel.
    print("KERNEL_OK")
</pallas_src>

<mosaic_0001>
module attributes {stable_mosaic.version = 11 : i64} {
  func.func @_mlp_kernel(%arg0: i32, %arg1: memref<16x128xbf16, #tpu.memory_space<vmem>>, %arg2: memref<128x384xbf16, #tpu.memory_space<vmem>>, %arg3: memref<1x384xf32, #tpu.memory_space<vmem>>, %arg4: memref<384x256xbf16, #tpu.memory_space<vmem>>, %arg5: memref<1x256xf32, #tpu.memory_space<vmem>>, %arg6: memref<256x128xbf16, #tpu.memory_space<vmem>>, %arg7: memref<1x128xf32, #tpu.memory_space<vmem>>, %arg8: memref<128x256xbf16, #tpu.memory_space<vmem>>, %arg9: memref<1x256xf32, #tpu.memory_space<vmem>>, %arg10: memref<256x384xbf16, #tpu.memory_space<vmem>>, %arg11: memref<1x384xf32, #tpu.memory_space<vmem>>, %arg12: memref<384x128xbf16, #tpu.memory_space<vmem>>, %arg13: memref<1x128xf32, #tpu.memory_space<vmem>>, %arg14: memref<1x128xf32, #tpu.memory_space<vmem>>, %arg15: memref<8x128xf32, #tpu.memory_space<vmem>>, %arg16: memref<16x128xf32, #tpu.memory_space<vmem>>, %arg17: memref<16x128xbf16, #tpu.memory_space<vmem>>) attributes {dimension_semantics = [#tpu.dimension_semantics<parallel>], iteration_bounds = array<i64: 1>, scalar_prefetch = 0 : i64, scratch_operands = 0 : i64, tpu.core_type = #tpu.core_type<tc>, window_params = [{transform_indices = @transform_0, window_bounds = array<i64: 16, 128>}, {pipeline_mode = #tpu.pipeline_mode<synchronous>, transform_indices = @transform_1, window_bounds = array<i64: 128, 384>}, {pipeline_mode = #tpu.pipeline_mode<synchronous>, transform_indices = @transform_2, window_bounds = array<i64: 1, 384>}, {pipeline_mode = #tpu.pipeline_mode<synchronous>, transform_indices = @transform_3, window_bounds = array<i64: 384, 256>}, {pipeline_mode = #tpu.pipeline_mode<synchronous>, transform_indices = @transform_4, window_bounds = array<i64: 1, 256>}, {pipeline_mode = #tpu.pipeline_mode<synchronous>, transform_indices = @transform_5, window_bounds = array<i64: 256, 128>}, {pipeline_mode = #tpu.pipeline_mode<synchronous>, transform_indices = @transform_6, window_bounds = array<i64: 1, 128>}, {pipeline_mode = #tpu.pipeline_mode<synchronous>, transform_indices = @transform_7, window_bounds = array<i64: 128, 256>}, {pipeline_mode = #tpu.pipeline_mode<synchronous>, transform_indices = @transform_8, window_bounds = array<i64: 1, 256>}, {pipeline_mode = #tpu.pipeline_mode<synchronous>, transform_indices = @transform_9, window_bounds = array<i64: 256, 384>}, {pipeline_mode = #tpu.pipeline_mode<synchronous>, transform_indices = @transform_10, window_bounds = array<i64: 1, 384>}, {pipeline_mode = #tpu.pipeline_mode<synchronous>, transform_indices = @transform_11, window_bounds = array<i64: 384, 128>}, {pipeline_mode = #tpu.pipeline_mode<synchronous>, transform_indices = @transform_12, window_bounds = array<i64: 1, 128>}, {pipeline_mode = #tpu.pipeline_mode<synchronous>, transform_indices = @transform_13, window_bounds = array<i64: 1, 128>}, {pipeline_mode = #tpu.pipeline_mode<synchronous>, transform_indices = @transform_14, window_bounds = array<i64: 8, 128>}, {transform_indices = @transform_15, window_bounds = array<i64: 16, 128>}, {transform_indices = @transform_16, window_bounds = array<i64: 16, 128>}]} {
    %c0 = arith.constant 0 : index
    %c0_0 = arith.constant 0 : index
    %0 = vector.load %arg1[%c0, %c0_0] : memref<16x128xbf16, #tpu.memory_space<vmem>>, vector<16x128xbf16>
    %c0_1 = arith.constant 0 : index
    %c0_2 = arith.constant 0 : index
    %1 = vector.load %arg2[%c0_1, %c0_2] : memref<128x384xbf16, #tpu.memory_space<vmem>>, vector<128x384xbf16>
    %cst = arith.constant dense<0.000000e+00> : vector<16x384xf32>
    %2 = tpu.matmul %0, %1, %cst {dimension_numbers = #tpu.dot_dimension_numbers<[1], [0], [0], [1], [0, 0, 1, 1], [], []>} : vector<16x128xbf16>, vector<128x384xbf16>, vector<16x384xf32> -> vector<16x384xf32>
    %c0_3 = arith.constant 0 : index
    %c0_4 = arith.constant 0 : index
    %3 = vector.load %arg3[%c0_3, %c0_4] : memref<1x384xf32, #tpu.memory_space<vmem>>, vector<1x384xf32>
    %4 = vector.broadcast %3 : vector<1x384xf32> to vector<16x384xf32>
    %5 = arith.addf %2, %4 : vector<16x384xf32>
    %cst_5 = arith.constant 0.000000e+00 : f32
    %6 = vector.broadcast %cst_5 : f32 to vector<16x384xf32>
    %7 = arith.maximumf %5, %6 : vector<16x384xf32>
    %8 = arith.truncf %7 : vector<16x384xf32> to vector<16x384xbf16>
    %c0_6 = arith.constant 0 : index
    %c0_7 = arith.constant 0 : index
    %9 = vector.load %arg4[%c0_6, %c0_7] : memref<384x256xbf16, #tpu.memory_space<vmem>>, vector<384x256xbf16>
    %cst_8 = arith.constant dense<0.000000e+00> : vector<16x256xf32>
    %10 = tpu.matmul %8, %9, %cst_8 {dimension_numbers = #tpu.dot_dimension_numbers<[1], [0], [0], [1], [0, 0, 1, 1], [], []>} : vector<16x384xbf16>, vector<384x256xbf16>, vector<16x256xf32> -> vector<16x256xf32>
    %c0_9 = arith.constant 0 : index
    %c0_10 = arith.constant 0 : index
    %11 = vector.load %arg5[%c0_9, %c0_10] : memref<1x256xf32, #tpu.memory_space<vmem>>, vector<1x256xf32>
    %12 = vector.broadcast %11 : vector<1x256xf32> to vector<16x256xf32>
    %13 = arith.addf %10, %12 : vector<16x256xf32>
    %cst_11 = arith.constant 0.000000e+00 : f32
    %14 = vector.broadcast %cst_11 : f32 to vector<16x256xf32>
    %15 = arith.maximumf %13, %14 : vector<16x256xf32>
    %16 = arith.truncf %15 : vector<16x256xf32> to vector<16x256xbf16>
    %c0_12 = arith.constant 0 : index
    %c0_13 = arith.constant 0 : index
    %17 = vector.load %arg6[%c0_12, %c0_13] : memref<256x128xbf16, #tpu.memory_space<vmem>>, vector<256x128xbf16>
    %cst_14 = arith.constant dense<0.000000e+00> : vector<16x128xf32>
    %18 = tpu.matmul %16, %17, %cst_14 {dimension_numbers = #tpu.dot_dimension_numbers<[1], [0], [0], [1], [0, 0, 1, 1], [], []>} : vector<16x256xbf16>, vector<256x128xbf16>, vector<16x128xf32> -> vector<16x128xf32>
    %c0_15 = arith.constant 0 : index
    %c0_16 = arith.constant 0 : index
    %19 = vector.load %arg7[%c0_15, %c0_16] : memref<1x128xf32, #tpu.memory_space<vmem>>, vector<1x128xf32>
    %20 = vector.broadcast %19 : vector<1x128xf32> to vector<16x128xf32>
    %21 = arith.addf %18, %20 : vector<16x128xf32>
    %cst_17 = arith.constant 0.000000e+00 : f32
    %22 = vector.broadcast %cst_17 : f32 to vector<16x128xf32>
    %23 = arith.maximumf %21, %22 : vector<16x128xf32>
    %24 = arith.truncf %23 : vector<16x128xf32> to vector<16x128xbf16>
    %c0_18 = arith.constant 0 : index
    %c0_19 = arith.constant 0 : index
    %25 = vector.load %arg17[%c0_18, %c0_19] : memref<16x128xbf16, #tpu.memory_space<vmem>>, vector<16x128xbf16>
    tpu.vector_store %arg17[%c0_18, %c0_19], %24 {strides = array<i32>} : memref<16x128xbf16, #tpu.memory_space<vmem>>, vector<16x128xbf16>,
    %c0_20 = arith.constant 0 : index
    %c0_21 = arith.constant 0 : index
    %26 = vector.load %arg8[%c0_20, %c0_21] : memref<128x256xbf16, #tpu.memory_space<vmem>>, vector<128x256xbf16>
    %cst_22 = arith.constant dense<0.000000e+00> : vector<16x256xf32>
    %27 = tpu.matmul %24, %26, %cst_22 {dimension_numbers = #tpu.dot_dimension_numbers<[1], [0], [0], [1], [0, 0, 1, 1], [], []>} : vector<16x128xbf16>, vector<128x256xbf16>, vector<16x256xf32> -> vector<16x256xf32>
    %c0_23 = arith.constant 0 : index
    %c0_24 = arith.constant 0 : index
    %28 = vector.load %arg9[%c0_23, %c0_24] : memref<1x256xf32, #tpu.memory_space<vmem>>, vector<1x256xf32>
    %29 = vector.broadcast %28 : vector<1x256xf32> to vector<16x256xf32>
    %30 = arith.addf %27, %29 : vector<16x256xf32>
    %cst_25 = arith.constant 0.000000e+00 : f32
    %31 = vector.broadcast %cst_25 : f32 to vector<16x256xf32>
    %32 = arith.maximumf %30, %31 : vector<16x256xf32>
    %33 = arith.truncf %32 : vector<16x256xf32> to vector<16x256xbf16>
    %c0_26 = arith.constant 0 : index
    %c0_27 = arith.constant 0 : index
    %34 = vector.load %arg10[%c0_26, %c0_27] : memref<256x384xbf16, #tpu.memory_space<vmem>>, vector<256x384xbf16>
    %cst_28 = arith.constant dense<0.000000e+00> : vector<16x384xf32>
    %35 = tpu.matmul %33, %34, %cst_28 {dimension_numbers = #tpu.dot_dimension_numbers<[1], [0], [0], [1], [0, 0, 1, 1], [], []>} : vector<16x256xbf16>, vector<256x384xbf16>, vector<16x384xf32> -> vector<16x384xf32>
    %c0_29 = arith.constant 0 : index
    %c0_30 = arith.constant 0 : index
    %36 = vector.load %arg11[%c0_29, %c0_30] : memref<1x384xf32, #tpu.memory_space<vmem>>, vector<1x384xf32>
    %37 = vector.broadcast %36 : vector<1x384xf32> to vector<16x384xf32>
    %38 = arith.addf %35, %37 : vector<16x384xf32>
    %cst_31 = arith.constant 0.000000e+00 : f32
    %39 = vector.broadcast %cst_31 : f32 to vector<16x384xf32>
    %40 = arith.maximumf %38, %39 : vector<16x384xf32>
    %41 = arith.truncf %40 : vector<16x384xf32> to vector<16x384xbf16>
    %c0_32 = arith.constant 0 : index
    %c0_33 = arith.constant 0 : index
    %42 = vector.load %arg12[%c0_32, %c0_33] : memref<384x128xbf16, #tpu.memory_space<vmem>>, vector<384x128xbf16>
    %cst_34 = arith.constant dense<0.000000e+00> : vector<16x128xf32>
    %43 = tpu.matmul %41, %42, %cst_34 {dimension_numbers = #tpu.dot_dimension_numbers<[1], [0], [0], [1], [0, 0, 1, 1], [], []>} : vector<16x384xbf16>, vector<384x128xbf16>, vector<16x128xf32> -> vector<16x128xf32>
    %c0_35 = arith.constant 0 : index
    %c0_36 = arith.constant 0 : index
    %44 = vector.load %arg13[%c0_35, %c0_36] : memref<1x128xf32, #tpu.memory_space<vmem>>, vector<1x128xf32>
    %45 = vector.broadcast %44 : vector<1x128xf32> to vector<16x128xf32>
    %46 = arith.addf %43, %45 : vector<16x128xf32>
    %c0_37 = arith.constant 0 : index
    %c0_38 = arith.constant 0 : index
    %47 = vector.load %arg14[%c0_37, %c0_38] : memref<1x128xf32, #tpu.memory_space<vmem>>, vector<1x128xf32>
    %c0_39 = arith.constant 0 : index
    %c0_40 = arith.constant 0 : index
    %48 = vector.load %arg15[%c0_39, %c0_40] : memref<8x128xf32, #tpu.memory_space<vmem>>, vector<8x128xf32>
    %cst_41 = arith.constant 5.000000e-01 : f32
    %49 = vector.broadcast %cst_41 : f32 to vector<1x128xf32>
    %50 = arith.cmpf ogt, %47, %49 : vector<1x128xf32>
    %cst_42 = arith.constant dense<0.000000e+00> : vector<128xf32>
    %51 = vector.multi_reduction <add>, %48, %cst_42 [0] : vector<8x128xf32> to vector<128xf32>
    %52 = vector.shape_cast %51 : vector<128xf32> to vector<1x128xf32>
    %cst_43 = arith.constant 5.000000e-01 : f32
    %53 = vector.broadcast %cst_43 : f32 to vector<1x128xf32>
    %54 = arith.cmpf ogt, %52, %53 : vector<1x128xf32>
    %cst_44 = arith.constant 0.000000e+00 : f32
    %55 = vector.broadcast %cst_44 : f32 to vector<16x128xf32>
    %56 = vector.extract_strided_slice %48 {offsets = [0, 0], sizes = [1, 128], strides = [1, 1]} : vector<8x128xf32> to vector<1x128xf32>
    %cst_45 = arith.constant 5.000000e-01 : f32
    %57 = vector.broadcast %cst_45 : f32 to vector<1x128xf32>
    %58 = arith.cmpf ogt, %56, %57 : vector<1x128xf32>
    %cst_46 = arith.constant -1.000000e+30 : f32
    %59 = vector.shape_cast %58 : vector<1x128xi1> to vector<1x128xi1>
    %60 = vector.broadcast %59 : vector<1x128xi1> to vector<16x128xi1>
    %61 = vector.broadcast %cst_46 : f32 to vector<16x128xf32>
    %62 = arith.select %60, %46, %61 : vector<16x128xi1>, vector<16x128xf32>
    %cst_47 = arith.constant dense<0xFF800000> : vector<16xf32>
    %63 = vector.multi_reduction <maximumf>, %62, %cst_47 [1] : vector<16x128xf32> to vector<16xf32>
    %64 = vector.shape_cast %63 : vector<16xf32> to vector<16x1xf32>
    %65 = vector.broadcast %56 : vector<1x128xf32> to vector<16x128xf32>
    %66 = vector.broadcast %64 : vector<16x1xf32> to vector<16x128xf32>
    %67 = arith.mulf %65, %66 : vector<16x128xf32>
    %68 = arith.addf %55, %67 : vector<16x128xf32>
    %69 = vector.extract_strided_slice %48 {offsets = [1, 0], sizes = [1, 128], strides = [1, 1]} : vector<8x128xf32> to vector<1x128xf32>
    %cst_48 = arith.constant 5.000000e-01 : f32
    %70 = vector.broadcast %cst_48 : f32 to vector<1x128xf32>
    %71 = arith.cmpf ogt, %69, %70 : vector<1x128xf32>
    %cst_49 = arith.constant -1.000000e+30 : f32
    %72 = vector.shape_cast %71 : vector<1x128xi1> to vector<1x128xi1>
    %73 = vector.broadcast %72 : vector<1x128xi1> to vector<16x128xi1>
    %74 = vector.broadcast %cst_49 : f32 to vector<16x128xf32>
    %75 = arith.select %73, %46, %74 : vector<16x128xi1>, vector<16x128xf32>
    %cst_50 = arith.constant dense<0xFF800000> : vector<16xf32>
    %76 = vector.multi_reduction <maximumf>, %75, %cst_50 [1] : vector<16x128xf32> to vector<16xf32>
    %77 = vector.shape_cast %76 : vector<16xf32> to vector<16x1xf32>
    %78 = vector.broadcast %69 : vector<1x128xf32> to vector<16x128xf32>
    %79 = vector.broadcast %77 : vector<16x1xf32> to vector<16x128xf32>
    %80 = arith.mulf %78, %79 : vector<16x128xf32>
    %81 = arith.addf %68, %80 : vector<16x128xf32>
    %cst_51 = arith.constant 0.000000e+00 : f32
    %82 = vector.broadcast %cst_51 : f32 to vector<16x128xf32>
    %83 = arith.subf %82, %46 : vector<16x128xf32>
    %84 = arith.subf %46, %81 : vector<16x128xf32>
    %cst_52 = arith.constant 0.000000e+00 : f32
    %85 = vector.shape_cast %54 : vector<1x128xi1> to vector<1x128xi1>
    %86 = vector.broadcast %85 : vector<1x128xi1> to vector<16x128xi1>
    %87 = vector.broadcast %cst_52 : f32 to vector<16x128xf32>
    %88 = arith.select %86, %84, %87 : vector<16x128xi1>, vector<16x128xf32>
    %89 = vector.shape_cast %50 : vector<1x128xi1> to vector<1x128xi1>
    %90 = vector.broadcast %89 : vector<1x128xi1> to vector<16x128xi1>
    %91 = arith.select %90, %83, %88 : vector<16x128xi1>, vector<16x128xf32>
    %cst_53 = arith.constant 8.000000e+01 : f32
    %92 = vector.broadcast %cst_53 : f32 to vector<16x128xf32>
    %93 = arith.minimumf %91, %92 : vector<16x128xf32>
    %94 = math.exp %93 : vector<16x128xf32>
    %cst_54 = arith.constant dense<0.000000e+00> : vector<16x8xf32>
    %95 = tpu.matmul %94, %48, %cst_54 {dimension_numbers = #tpu.dot_dimension_numbers<[1], [1], [0], [0], [0, 0, 1, 0], [], []>} : vector<16x128xf32>, vector<8x128xf32>, vector<16x8xf32> -> vector<16x8xf32>
    %cst_55 = arith.constant dense<0.000000e+00> : vector<16x128xf32>
    %96 = tpu.matmul %95, %48, %cst_55 {dimension_numbers = #tpu.dot_dimension_numbers<[1], [0], [0], [1], [0, 0, 1, 1], [], []>} : vector<16x8xf32>, vector<8x128xf32>, vector<16x128xf32> -> vector<16x128xf32>
    %cst_56 = arith.constant 1.000000e+00 : f32
    %97 = vector.broadcast %cst_56 : f32 to vector<16x128xf32>
    %98 = arith.addf %97, %94 : vector<16x128xf32>
    %99 = tpu.reciprocal %98 {approx = true} : vector<16x128xf32> -> vector<16x128xf32>
    %100 = vector.shape_cast %50 : vector<1x128xi1> to vector<1x128xi1>
    %101 = vector.broadcast %100 : vector<1x128xi1> to vector<16x128xi1>
    %102 = arith.select %101, %99, %46 : vector<16x128xi1>, vector<16x128xf32>
    %103 = tpu.reciprocal %96 {approx = true} : vector<16x128xf32> -> vector<16x128xf32>
    %104 = arith.mulf %94, %103 : vector<16x128xf32>
    %105 = vector.shape_cast %54 : vector<1x128xi1> to vector<1x128xi1>
    %106 = vector.broadcast %105 : vector<1x128xi1> to vector<16x128xi1>
    %107 = arith.select %106, %104, %102 : vector<16x128xi1>, vector<16x128xf32>
    %c0_57 = arith.constant 0 : index
    %c0_58 = arith.constant 0 : index
    %108 = vector.load %arg16[%c0_57, %c0_58] : memref<16x128xf32, #tpu.memory_space<vmem>>, vector<16x128xf32>
    tpu.vector_store %arg16[%c0_57, %c0_58], %107 {strides = array<i32>} : memref<16x128xf32, #tpu.memory_space<vmem>>, vector<16x128xf32>,
    return
  }
  func.func @transform_0(%arg0: i32) -> (i32, i32) {
    %c0_i32 = arith.constant 0 : i32
    %c0_i32_0 = arith.constant 0 : i32
    return %arg0, %c0_i32 : i32, i32
  }
  func.func @transform_1(%arg0: i32) -> (i32, i32) {
    %c0_i32 = arith.constant 0 : i32
    %c0_i32_0 = arith.constant 0 : i32
    %c0_i32_1 = arith.constant 0 : i32
    return %c0_i32, %c0_i32_0 : i32, i32
  }
  func.func @transform_2(%arg0: i32) -> (i32, i32) {
    %c0_i32 = arith.constant 0 : i32
    %c0_i32_0 = arith.constant 0 : i32
    %c0_i32_1 = arith.constant 0 : i32
    return %c0_i32, %c0_i32_0 : i32, i32
  }
  func.func @transform_3(%arg0: i32) -> (i32, i32) {
    %c0_i32 = arith.constant 0 : i32
    %c0_i32_0 = arith.constant 0 : i32
    %c0_i32_1 = arith.constant 0 : i32
    return %c0_i32, %c0_i32_0 : i32, i32
  }
  func.func @transform_4(%arg0: i32) -> (i32, i32) {
    %c0_i32 = arith.constant 0 : i32
    %c0_i32_0 = arith.constant 0 : i32
    %c0_i32_1 = arith.constant 0 : i32
    return %c0_i32, %c0_i32_0 : i32, i32
  }
  func.func @transform_5(%arg0: i32) -> (i32, i32) {
    %c0_i32 = arith.constant 0 : i32
    %c0_i32_0 = arith.constant 0 : i32
    %c0_i32_1 = arith.constant 0 : i32
    return %c0_i32, %c0_i32_0 : i32, i32
  }
  func.func @transform_6(%arg0: i32) -> (i32, i32) {
    %c0_i32 = arith.constant 0 : i32
    %c0_i32_0 = arith.constant 0 : i32
    %c0_i32_1 = arith.constant 0 : i32
    return %c0_i32, %c0_i32_0 : i32, i32
  }
  func.func @transform_7(%arg0: i32) -> (i32, i32) {
    %c0_i32 = arith.constant 0 : i32
    %c0_i32_0 = arith.constant 0 : i32
    %c0_i32_1 = arith.constant 0 : i32
    return %c0_i32, %c0_i32_0 : i32, i32
  }
  func.func @transform_8(%arg0: i32) -> (i32, i32) {
    %c0_i32 = arith.constant 0 : i32
    %c0_i32_0 = arith.constant 0 : i32
    %c0_i32_1 = arith.constant 0 : i32
    return %c0_i32, %c0_i32_0 : i32, i32
  }
  func.func @transform_9(%arg0: i32) -> (i32, i32) {
    %c0_i32 = arith.constant 0 : i32
    %c0_i32_0 = arith.constant 0 : i32
    %c0_i32_1 = arith.constant 0 : i32
    return %c0_i32, %c0_i32_0 : i32, i32
  }
  func.func @transform_10(%arg0: i32) -> (i32, i32) {
    %c0_i32 = arith.constant 0 : i32
    %c0_i32_0 = arith.constant 0 : i32
    %c0_i32_1 = arith.constant 0 : i32
    return %c0_i32, %c0_i32_0 : i32, i32
  }
  func.func @transform_11(%arg0: i32) -> (i32, i32) {
    %c0_i32 = arith.constant 0 : i32
    %c0_i32_0 = arith.constant 0 : i32
    %c0_i32_1 = arith.constant 0 : i32
    return %c0_i32, %c0_i32_0 : i32, i32
  }
  func.func @transform_12(%arg0: i32) -> (i32, i32) {
    %c0_i32 = arith.constant 0 : i32
    %c0_i32_0 = arith.constant 0 : i32
    %c0_i32_1 = arith.constant 0 : i32
    return %c0_i32, %c0_i32_0 : i32, i32
  }
  func.func @transform_13(%arg0: i32) -> (i32, i32) {
    %c0_i32 = arith.constant 0 : i32
    %c0_i32_0 = arith.constant 0 : i32
    %c0_i32_1 = arith.constant 0 : i32
    return %c0_i32, %c0_i32_0 : i32, i32
  }
  func.func @transform_14(%arg0: i32) -> (i32, i32) {
    %c0_i32 = arith.constant 0 : i32
    %c0_i32_0 = arith.constant 0 : i32
    %c0_i32_1 = arith.constant 0 : i32
    return %c0_i32, %c0_i32_0 : i32, i32
  }
  func.func @transform_15(%arg0: i32) -> (i32, i32) {
    %c0_i32 = arith.constant 0 : i32
    %c0_i32_0 = arith.constant 0 : i32
    return %arg0, %c0_i32 : i32, i32
  }
  func.func @transform_16(%arg0: i32) -> (i32, i32) {
    %c0_i32 = arith.constant 0 : i32
    %c0_i32_0 = arith.constant 0 : i32
    return %arg0, %c0_i32 : i32, i32
  }
}

</mosaic_0001>

<bundles_post_ra>
// kernel: mixed_autoencoder_forward.1
= control target key start
LH: loop header
LB: loop body
LE: loop exit
PB: predicated region body
PF: predicated region fallthrough
CT: control target
= control target key end

     0   :  { %s3113_s0 = inlined_call_operand.vmem [shape: bf16[16,128], index: 0, kind: input, shape index: {}]   ;;  %s3114_s1 = inlined_call_operand.hbm [shape: bf16[128,384], index: 1, kind: input, shape index: {}]   ;;  %s3115_s2 = inlined_call_operand.vmem [shape: f32[1,384], index: 2, kind: input, shape index: {}]   ;;  %s3116_s3 = inlined_call_operand.hbm [shape: bf16[384,256], index: 3, kind: input, shape index: {}]   ;;  %s3117_s4 = inlined_call_operand.vmem [shape: f32[1,256], index: 4, kind: input, shape index: {}]   ;;  %s3118_s5 = inlined_call_operand.hbm [shape: bf16[256,128], index: 5, kind: input, shape index: {}]   ;;  %s3119_s6 = inlined_call_operand.vmem [shape: f32[1,128], index: 6, kind: input, shape index: {}]   ;;  %s3120_s7 = inlined_call_operand.hbm [shape: bf16[128,256], index: 7, kind: input, shape index: {}]   ;;  %s3121_s8 = inlined_call_operand.vmem [shape: f32[1,256], index: 8, kind: input, shape index: {}]   ;;  %s3122_s9 = inlined_call_operand.hbm [shape: bf16[256,384], index: 9, kind: input, shape index: {}]   ;;  %s3123_s10 = inlined_call_operand.vmem [shape: f32[1,384], index: 10, kind: input, shape index: {}]   ;;  %s3124_s11 = inlined_call_operand.hbm [shape: bf16[384,128], index: 11, kind: input, shape index: {}]   ;;  %s3125_s12 = inlined_call_operand.vmem [shape: f32[1,128], index: 12, kind: input, shape index: {}]   ;;  %s3126_s13 = inlined_call_operand.vmem [shape: f32[1,128], index: 13, kind: input, shape index: {}]   ;;  %s3127_s14 = inlined_call_operand.vmem [shape: f32[8,128], index: 14, kind: input, shape index: {}]   ;;  %s3128_s15 = inlined_call_operand.vmem [shape: f32[16,128], index: 15, kind: output, shape index: {0}]   ;;  %s3129_s16 = inlined_call_operand.vmem [shape: bf16[16,128], index: 16, kind: output, shape index: {1}]  }
   0x1   :  { %3130 = sst [smem:[#allocation16_spill]] %s3113_s0 }
   0x2   :  { %22 = vsyncpa [#allocation3], 0 }
   0x3   :  { %23 = vsyncpa [#allocation5], 0 }
   0x4   :  { %24 = vsyncpa [#allocation8], 0  ;;  %s47_s23 = sshll.u32 %s3116_s3, 4  ;;  %s48_s23 = int_to_ptr.hbm [resolvable:$true] %s47_s23 }
   0x5   :  { %25 = vsyncpa [#allocation11], 0  ;;  %s2931_s24 = smov [#allocation4]   ;;  %s77_s28 = sshll.u32 %s3120_s7, 4  ;;  %s78_s28 = int_to_ptr.hbm [resolvable:$true] %s77_s28 }
   0x6   :  { %s49_s25 = sshll.u32 %s2931_s24, 4  ;;  %s2932_s29 = smov 128   ;;  %s50_s25 = int_to_ptr.vmem [resolvable:$true] %s49_s25 }
   0x7   :  { %s2933_s30 = smov 8   ;;  %s2934_s0 = smov [#allocation7]  }
   0x8   :  { %55 = dma.hbm_to_vmem [thread:$0]  %s48_s23, 6144, %s50_s25, [#allocation5], %s2932_s29, %s2932_s29, %s2933_s30  }
   0x9   :  { %s79_s17 = sshll.u32 %s2934_s0, 4  ;;  %s32_s20 = sshll.u32 %s3114_s1, 4  ;;  %s80_s17 = int_to_ptr.vmem [resolvable:$true] %s79_s17  ;;  %s33_s20 = int_to_ptr.hbm [resolvable:$true] %s32_s20 }
   0xa   :  { %85 = dma.hbm_to_vmem [thread:$0]  %s78_s28, 2048, %s80_s17, [#allocation8], %s2932_s29, %s2932_s29, %s2933_s30  }
   0xb   :  { %s2935_s3 = smov [#allocation2]   ;;  %s62_s7 = sshll.u32 %s3118_s5, 4  ;;  %s63_s7 = int_to_ptr.hbm [resolvable:$true] %s62_s7 }
   0xc   :  { %s34_s21 = sshll.u32 %s2935_s3, 4  ;;  %s2936_s26 = smov 192   ;;  %s35_s21 = int_to_ptr.vmem [resolvable:$true] %s34_s21 }
   0xd   :  { %s2937_s27 = smov 12   ;;  %s2938_s23 = smov [#allocation6]  }
   0xe   :  { %40 = dma.hbm_to_vmem [thread:$0]  %s33_s20, 3072, %s35_s21, [#allocation3], %s2936_s26, %s2936_s26, %s2937_s27  }
   0xf   :  { %s64_s25 = sshll.u32 %s2938_s23, 4  ;;  %s2939_s0 = smov 64   ;;  %s65_s25 = int_to_ptr.vmem [resolvable:$true] %s64_s25 }
  0x10   :  { %s2940_s18 = smov 4   ;;  %s92_s28 = sshll.u32 %s3122_s9, 4  ;;  %s93_s28 = int_to_ptr.hbm [resolvable:$true] %s92_s28 }
  0x11   :  { %70 = dma.hbm_to_vmem [thread:$0]  %s63_s7, 2048, %s65_s25, [#allocation5], %s2939_s0, %s2939_s0, %s2940_s18  }
  0x12   :  { %s2941_s29 = smov [#allocation9]   ;;  %s107_s3 = sshll.u32 %s3124_s11, 4  ;;  %s108_s3 = int_to_ptr.hbm [resolvable:$true] %s107_s3 }
  0x13   :  { %s94_s30 = sshll.u32 %s2941_s29, 4  ;;  %s2942_s20 = smov [#allocation10]   ;;  %s95_s30 = int_to_ptr.vmem [resolvable:$true] %s94_s30 }
  0x14   :  { %100 = dma.hbm_to_vmem [thread:$0]  %s93_s28, 6144, %s95_s30, [#allocation8], %s2936_s26, %s2936_s26, %s2937_s27  }
  0x15   :  { %s109_s21 = sshll.u32 %s2942_s20, 4  ;;  %s110_s21 = int_to_ptr.vmem [resolvable:$true] %s109_s21 }
  0x16   :  { %115 = dma.hbm_to_vmem [thread:$0]  %s108_s3, 3072, %s110_s21, [#allocation11], %s2939_s0, %s2939_s0, %s2940_s18  }
  0x17   :  { %2923 = dma.done.wait [#allocation3], 3072  }
  0x18   :  { %2924 = vsyncadd [#allocation3], 4294964224 }
  0x19   :  { %2925 = dma.done.wait [#allocation5], 8192  }
  0x1a   :  { %2926 = vsyncadd [#allocation5], 4294959104 }
  0x1b   :  { %2927 = dma.done.wait [#allocation8], 8192  }
  0x1c   :  { %2928 = vsyncadd [#allocation8], 4294959104 }
  0x1d   :  { %2929 = dma.done.wait [#allocation11], 3072  }
  0x1e   :  { %2930 = vsyncadd [#allocation11], 4294964224  ;;  %v1950_v0 = vld [vmem:[#allocation2 + $0xa8] sm:$0xf]  ;;  %v2593_v1 = vld [vmem:[#allocation2 + $0xb0] sm:$0xf0] }
  0x1f   :  { %v2592_v2 = vld [vmem:[#allocation2 + $0xac] sm:$0xf]  ;;  %v1951_v3 = vor.u32 %v2593_v1, %v1950_v0  ;;  %v1952_v4 = vld [vmem:[#allocation2 + $0xb4] sm:$0xf0]  ;;  %v1958_v5 = vld [vmem:[#allocation2 + $0xb0] sm:$0xf] }
  0x20   :  { %v2594_v6 = vld [vmem:[#allocation2 + $0xb8] sm:$0xf0]  ;;  %v1955_v7 = vor.u32 %v2592_v2, %v1952_v4  ;;  %v1938_v9 = vld [vmem:[#allocation2 + $0x90] sm:$0xf]  ;;  %v2589_v11 = vld [vmem:[#allocation2 + $0x94] sm:$0xf] }
  0x21   :  { %v1959_v8 = vor.u32 %v2594_v6, %v1958_v5  ;;  %v2590_v10 = vld [vmem:[#allocation2 + $0x98] sm:$0xf0]  ;;  %322 = vmatpush.bf16.msra.mxu0 %v1951_v3  ;;  %v1940_v13 = vld [vmem:[#allocation2 + $0x9c] sm:$0xf0]  ;;  %v1946_v14 = vld [vmem:[#allocation2 + $0x98] sm:$0xf] }
  0x22   :  { %v1939_v12 = vor.u32 %v2590_v10, %v1938_v9  ;;  %v2591_v15 = vld [vmem:[#allocation2 + $0xa0] sm:$0xf0]  ;;  %336 = vmatpush.bf16.msra.mxu1 %v1955_v7  ;;  %v1943_v16 = vor.u32 %v2589_v11, %v1940_v13  ;;  %v1926_v18 = vld [vmem:[#allocation2 + $0x78] sm:$0xf]  ;;  %v2586_v20 = vld [vmem:[#allocation2 + $0x7c] sm:$0xf] }
  0x23   :  { %350 = vmatpush.bf16.msra.mxu2 %v1959_v8  ;;  %v1947_v17 = vor.u32 %v2591_v15, %v1946_v14  ;;  %v2587_v19 = vld [vmem:[#allocation2 + $0x80] sm:$0xf0]  ;;  %v1928_v21 = vld [vmem:[#allocation2 + $0x84] sm:$0xf0]  ;;  %v1934_v22 = vld [vmem:[#allocation2 + $0x80] sm:$0xf] }
  0x24   :  { %v2588_v23 = vld [vmem:[#allocation2 + $0x88] sm:$0xf0]  ;;  %v1927_v24 = vor.u32 %v2587_v19, %v1926_v18  ;;  %v1931_v25 = vor.u32 %v2586_v20, %v1928_v21  ;;  %v1914_v27 = vld [vmem:[#allocation2 + $0x60] sm:$0xf]  ;;  %v2583_v29 = vld [vmem:[#allocation2 + $0x64] sm:$0xf] }
  0x25   :  { %323 = vmatpush.bf16.msra.mxu0 %v1939_v12  ;;  %v1935_v26 = vor.u32 %v2588_v23, %v1934_v22  ;;  %v2584_v28 = vld [vmem:[#allocation2 + $0x68] sm:$0xf0]  ;;  %v1916_v30 = vld [vmem:[#allocation2 + $0x6c] sm:$0xf0]  ;;  %v1922_v31 = vld [vmem:[#allocation2 + $0x68] sm:$0xf] }
  0x26   :  { %337 = vmatpush.bf16.msra.mxu1 %v1943_v16  ;;  %v2585_v32 = vld [vmem:[#allocation2 + $0x70] sm:$0xf0]  ;;  %v1915_v33 = vor.u32 %v2584_v28, %v1914_v27  ;;  %v1919_v34 = vor.u32 %v2583_v29, %v1916_v30  ;;  %v1902_v36 = vld [vmem:[#allocation2 + $0x48] sm:$0xf]  ;;  %v2580_v38 = vld [vmem:[#allocation2 + $0x4c] sm:$0xf] }
  0x27   :  { %351 = vmatpush.bf16.msra.mxu2 %v1947_v17  ;;  %v1923_v35 = vor.u32 %v2585_v32, %v1922_v31  ;;  %v2581_v37 = vld [vmem:[#allocation2 + $0x50] sm:$0xf0]  ;;  %v1904_v39 = vld [vmem:[#allocation2 + $0x54] sm:$0xf0]  ;;  %v1910_v40 = vld [vmem:[#allocation2 + $0x50] sm:$0xf] }
  0x28   :  { %v2582_v41 = vld [vmem:[#allocation2 + $0x58] sm:$0xf0]  ;;  %v1903_v42 = vor.u32 %v2581_v37, %v1902_v36  ;;  %v1890_v43 = vld [vmem:[#allocation2 + $0x30] sm:$0xf]  ;;  %v2577_v45 = vld [vmem:[#allocation2 + $0x34] sm:$0xf]  ;;  %v1907_v46 = vor.u32 %v2580_v38, %v1904_v39 }
  0x29   :  { %324 = vmatpush.bf16.msra.mxu0 %v1927_v24  ;;  %v2578_v44 = vld [vmem:[#allocation2 + $0x38] sm:$0xf0]  ;;  %v1911_v47 = vor.u32 %v2582_v41, %v1910_v40  ;;  %v1892_v48 = vld [vmem:[#allocation2 + $0x3c] sm:$0xf0]  ;;  %v2018_v49 = vld [vmem:[#allocation4 + $0x70] sm:$0xf] }
  0x2a   :  { %338 = vmatpush.bf16.msra.mxu1 %v1931_v25  ;;  %v2610_v50 = vld [vmem:[#allocation4 + $0x74] sm:$0xf0]  ;;  %v2579_v52 = vld [vmem:[#allocation2 + $0x40] sm:$0xf0]  ;;  %v2010_v54 = vld [vmem:[#allocation4 + $0x60] sm:$0xf]  ;;  %v1891_v56 = vor.u32 %v2578_v44, %v1890_v43  ;;  %v1895_v60 = vor.u32 %v2577_v45, %v1892_v48 }
  0x2b   :  { %352 = vmatpush.bf16.msra.mxu2 %v1935_v26  ;;  %v1898_v51 = vld [vmem:[#allocation2 + $0x38] sm:$0xf]  ;;  %v2019_v53 = vor.u32 %v2610_v50, %v2018_v49  ;;  %v2608_v55 = vld [vmem:[#allocation4 + $0x64] sm:$0xf0]  ;;  %v2575_v58 = vld [vmem:[#allocation2 + $0x20] sm:$0xf0] }
  0x2c   :  { %v1878_v57 = vld [vmem:[#allocation2 + $0x18] sm:$0xf]  ;;  %v2011_v59 = vor.u32 %v2608_v55, %v2010_v54  ;;  %v1899_v61 = vor.u32 %v2579_v52, %v1898_v51  ;;  %v2574_v62 = vld [vmem:[#allocation2 + $0x1c] sm:$0xf]  ;;  %v2002_v63 = vld [vmem:[#allocation4 + $0x50] sm:$0xf] }
  0x2d   :  { %325 = vmatpush.bf16.msra.mxu0 %v1915_v33  ;;  %667 = vmatpush.bf16.msra.mxu3 %v2019_v53  ;;  %v2606_v0 = vld [vmem:[#allocation4 + $0x54] sm:$0xf0]  ;;  %v1880_v1 = vld [vmem:[#allocation2 + $0x24] sm:$0xf0]  ;;  %v1886_v2 = vld [vmem:[#allocation2 + $0x20] sm:$0xf]  ;;  %v1879_v4 = vor.u32 %v2575_v58, %v1878_v57 }
  0x2e   :  { %339 = vmatpush.bf16.msra.mxu1 %v1919_v34  ;;  %v2576_v3 = vld [vmem:[#allocation2 + $0x28] sm:$0xf0]  ;;  %v1866_v5 = vld [vmem:[#allocation2] sm:$0xf]  ;;  %v2571_v7 = vld [vmem:[#allocation2 + $0x4] sm:$0xf]  ;;  %v2003_v8 = vor.u32 %v2606_v0, %v2002_v63  ;;  %v1883_v9 = vor.u32 %v2574_v62, %v1880_v1 }
  0x2f   :  { %353 = vmatpush.bf16.msra.mxu2 %v1923_v35  ;;  %v2572_v6 = vld [vmem:[#allocation2 + $0x8] sm:$0xf0]  ;;  %v1887_v10 = vor.u32 %v2576_v3, %v1886_v2  ;;  %v1868_v11 = vld [vmem:[#allocation2 + $0xc] sm:$0xf0]  ;;  %v1994_v12 = vld [vmem:[#allocation4 + $0x40] sm:$0xf] }
  0x30   :  { %v2604_v13 = vld [vmem:[#allocation4 + $0x44] sm:$0xf0]  ;;  %v2573_v15 = vld [vmem:[#allocation2 + $0x10] sm:$0xf0]  ;;  %v2082_v16 = vld [vmem:[#allocation4 + $0xf0] sm:$0xf]  ;;  %v1867_v20 = vor.u32 %v2572_v6, %v1866_v5  ;;  %v1871_v24 = vor.u32 %v2571_v7, %v1868_v11 }
  0x31   :  { %326 = vmatpush.bf16.msra.mxu0 %v1903_v42  ;;  %668 = vmatpush.bf16.msra.mxu3 %v2011_v59  ;;  %v1874_v14 = vld [vmem:[#allocation2 + $0x8] sm:$0xf]  ;;  %v2626_v17 = vld [vmem:[#allocation4 + $0xf4] sm:$0xf0]  ;;  %v2609_v18 = vld [vmem:[#allocation4 + $0x74] sm:$0xf]  ;;  %v1995_v21 = vor.u32 %v2604_v13, %v1994_v12 }
  0x32   :  { %340 = vmatpush.bf16.msra.mxu1 %v1907_v46  ;;  %v2020_v19 = vld [vmem:[#allocation4 + $0x78] sm:$0xf0]  ;;  %v2146_v22 = vld [vmem:[#allocation4 + $0x170] sm:$0xf]  ;;  %v2642_v23 = vld [vmem:[#allocation4 + $0x174] sm:$0xf0]  ;;  %v1875_v25 = vor.u32 %v2573_v15, %v1874_v14  ;;  %v2083_v28 = vor.u32 %v2626_v17, %v2082_v16 }
  0x33   :  { %354 = vmatpush.bf16.msra.mxu2 %v1911_v47  ;;  %s3131_s22 = sld [smem:[#allocation16_spill]]  ;;  %v2074_v27 = vld [vmem:[#allocation4 + $0xe0] sm:$0xf]  ;;  %v2624_v29 = vld [vmem:[#allocation4 + $0xe4] sm:$0xf0]  ;;  %v2023_v30 = vor.u32 %v2609_v18, %v2020_v19  ;;  %v2147_v35 = vor.u32 %v2642_v23, %v2146_v22  ;;  %vm1804_vm6 = vcmask 64512  }
  0x34   :  { %v1986_v31 = vld [vmem:[#allocation4 + $0x30] sm:$0xf]  ;;  %v2602_v32 = vld [vmem:[#allocation4 + $0x34] sm:$0xf0]  ;;  %v2607_v33 = vld [vmem:[#allocation4 + $0x64] sm:$0xf]  ;;  %v2075_v39 = vor.u32 %v2624_v29, %v2074_v27 }
  0x35   :  { %327 = vmatpush.bf16.msra.mxu0 %v1891_v56  ;;  %669 = vmatpush.bf16.msra.mxu3 %v2003_v8  ;;  %v2012_v34 = vld [vmem:[#allocation4 + $0x68] sm:$0xf0]  ;;  %v2138_v36 = vld [vmem:[#allocation4 + $0x160] sm:$0xf]  ;;  %v2640_v37 = vld [vmem:[#allocation4 + $0x164] sm:$0xf0]  ;;  %v1987_v38 = vor.u32 %v2602_v32, %v1986_v31 }
  0x36   :  { %341 = vmatpush.bf16.msra.mxu1 %v1895_v60  ;;  %v2066_v40 = vld [vmem:[#allocation4 + $0xd0] sm:$0xf]  ;;  %v2015_v41 = vor.u32 %v2607_v33, %v2012_v34  ;;  %v1978_v42 = vld [vmem:[#allocation4 + $0x20] sm:$0xf]  ;;  %v2600_v43 = vld [vmem:[#allocation4 + $0x24] sm:$0xf0]  ;;  %v2139_v47 = vor.u32 %v2640_v37, %v2138_v36 }
  0x37   :  { %355 = vmatpush.bf16.msra.mxu2 %v1899_v61  ;;  %v2622_v44 = vld [vmem:[#allocation4 + $0xd4] sm:$0xf0]  ;;  %v2605_v45 = vld [vmem:[#allocation4 + $0x54] sm:$0xf]  ;;  %v2004_v46 = vld [vmem:[#allocation4 + $0x58] sm:$0xf0]  ;;  %v1979_v48 = vor.u32 %v2600_v43, %v1978_v42 }
  0x38   :  { %v2067_v49 = vor.u32 %v2622_v44, %v2066_v40  ;;  %v2058_v50 = vld [vmem:[#allocation4 + $0xc0] sm:$0xf]  ;;  %v2007_v51 = vor.u32 %v2605_v45, %v2004_v46  ;;  %v1970_v52 = vld [vmem:[#allocation4 + $0x10] sm:$0xf]  ;;  %v2598_v53 = vld [vmem:[#allocation4 + $0x14] sm:$0xf0] }
  0x39   :  { %328 = vmatpush.bf16.msra.mxu0 %v1879_v4  ;;  %v2570_v26 = vld [vmem:[%s3131_s22] sm:$0xff]  ;;  %670 = vmatpush.bf16.msra.mxu3 %v1995_v21  ;;  %v2620_v54 = vld [vmem:[#allocation4 + $0xc4] sm:$0xf0]  ;;  %v1996_v56 = vld [vmem:[#allocation4 + $0x48] sm:$0xf0]  ;;  %v1971_v57 = vor.u32 %v2598_v53, %v1970_v52 }
  0x3a   :  { %342 = vmatpush.bf16.msra.mxu1 %v1883_v9  ;;  %v2603_v55 = vld [vmem:[#allocation4 + $0x44] sm:$0xf]  ;;  %v2059_v58 = vor.u32 %v2620_v54, %v2058_v50  ;;  %v1962_v60 = vld [vmem:[#allocation4] sm:$0xf]  ;;  %v2596_v61 = vld [vmem:[#allocation4 + $0x4] sm:$0xf0] }
  0x3b   :  { %356 = vmatpush.bf16.msra.mxu2 %v1887_v10  ;;  %v1999_v59 = vor.u32 %v2603_v55, %v1996_v56  ;;  %v2050_v62 = vld [vmem:[#allocation4 + $0xb0] sm:$0xf]  ;;  %v2618_v63 = vld [vmem:[#allocation4 + $0xb4] sm:$0xf0]  ;;  %v1963_v0 = vor.u32 %v2596_v61, %v1962_v60  ;;  %v2042_v2 = vld [vmem:[#allocation4 + $0xa0] sm:$0xf] }
  0x3c   :  { %v2051_v1 = vor.u32 %v2618_v63, %v2050_v62  ;;  %v2616_v3 = vld [vmem:[#allocation4 + $0xa4] sm:$0xf0]  ;;  %v2034_v5 = vld [vmem:[#allocation4 + $0x90] sm:$0xf]  ;;  %v2614_v6 = vld [vmem:[#allocation4 + $0x94] sm:$0xf0] }
  0x3d   :  { %329 = vmatpush.bf16.msra.mxu0 %v1867_v20  ;;  %671 = vmatpush.bf16.msra.mxu3 %v1987_v38  ;;  %v2043_v4 = vor.u32 %v2616_v3, %v2042_v2  ;;  %v2035_v7 = vor.u32 %v2614_v6, %v2034_v5  ;;  %v2026_v8 = vld [vmem:[#allocation4 + $0x80] sm:$0xf]  ;;  %v2612_v9 = vld [vmem:[#allocation4 + $0x84] sm:$0xf0]  ;;  %v2130_v11 = vld [vmem:[#allocation4 + $0x150] sm:$0xf] }
  0x3e   :  { %343 = vmatpush.bf16.msra.mxu1 %v1871_v24  ;;  %v2027_v10 = vor.u32 %v2612_v9, %v2026_v8  ;;  %v2638_v12 = vld [vmem:[#allocation4 + $0x154] sm:$0xf0]  ;;  %v2601_v13 = vld [vmem:[#allocation4 + $0x34] sm:$0xf]  ;;  %v1988_v15 = vld [vmem:[#allocation4 + $0x38] sm:$0xf0] }
  0x3f   :  { %357 = vmatpush.bf16.msra.mxu2 %v1875_v25  ;;  %v2131_v14 = vor.u32 %v2638_v12, %v2130_v11  ;;  %v2625_v16 = vld [vmem:[#allocation4 + $0xf4] sm:$0xf]  ;;  %v2084_v17 = vld [vmem:[#allocation4 + $0xf8] sm:$0xf0]  ;;  %v1991_v18 = vor.u32 %v2601_v13, %v1988_v15  ;;  %v2122_v23 = vld [vmem:[#allocation4 + $0x140] sm:$0xf] }
  0x40   :  { %330 = vmatmul.bf16.vlgmr.msra.gmra.mxu0 %v2570_v26  ;;  %v2087_v19 = vor.u32 %v2625_v16, %v2084_v17  ;;  %v2641_v20 = vld [vmem:[#allocation4 + $0x174] sm:$0xf]  ;;  %v2148_v21 = vld [vmem:[#allocation4 + $0x178] sm:$0xf0]  ;;  %v2636_v24 = vld [vmem:[#allocation4 + $0x144] sm:$0xf0] }
  0x41   :  { %681 = vmatpush.bf16.msrb.mxu0 %v2083_v28  ;;  %344 = vmatmul.bf16.vlgmr.msra.gmra.mxu1 %v2570_v26  ;;  %v2151_v22 = vor.u32 %v2641_v20, %v2148_v21  ;;  %v2599_v25 = vld [vmem:[#allocation4 + $0x24] sm:$0xf]  ;;  %v1980_v27 = vld [vmem:[#allocation4 + $0x28] sm:$0xf0]  ;;  %v2634_v36 = vld [vmem:[#allocation4 + $0x134] sm:$0xf0] }
  0x42   :  { %695 = vmatpush.bf16.msrb.mxu1 %v2147_v35  ;;  %358 = vmatmul.bf16.vlgmr.msra.gmra.mxu2 %v2570_v26  ;;  %v2123_v26 = vor.u32 %v2636_v24, %v2122_v23  ;;  %v2623_v28 = vld [vmem:[#allocation4 + $0xe4] sm:$0xf]  ;;  %v1983_v29 = vor.u32 %v2599_v25, %v1980_v27  ;;  %v2140_v32 = vld [vmem:[#allocation4 + $0x168] sm:$0xf0]  ;;  %v2114_v35 = vld [vmem:[#allocation4 + $0x130] sm:$0xf] }
  0x43   :  { %709 = vmatpush.bf16.msrb.mxu2 %v2023_v30  ;;  %672 = vmatpush.bf16.msra.mxu3 %v1979_v48  ;;  %v2076_v30 = vld [vmem:[#allocation4 + $0xe8] sm:$0xf0]  ;;  %v2639_v31 = vld [vmem:[#allocation4 + $0x164] sm:$0xf]  ;;  %v2597_v37 = vld [vmem:[#allocation4 + $0x14] sm:$0xf]  ;;  %v2115_v38 = vor.u32 %v2634_v36, %v2114_v35 }
  0x44   :  { %v2079_v33 = vor.u32 %v2623_v28, %v2076_v30  ;;  %v2143_v34 = vor.u32 %v2639_v31, %v2140_v32  ;;  %v2621_v40 = vld [vmem:[#allocation4 + $0xd4] sm:$0xf]  ;;  %v2132_v45 = vld [vmem:[#allocation4 + $0x158] sm:$0xf0]  ;;  %v2632_v48 = vld [vmem:[#allocation4 + $0x124] sm:$0xf0] }
  0x45   :  { %682 = vmatpush.bf16.msrb.mxu0 %v2075_v39  ;;  %v1972_v39 = vld [vmem:[#allocation4 + $0x18] sm:$0xf0]  ;;  %v2637_v44 = vld [vmem:[#allocation4 + $0x154] sm:$0xf]  ;;  %v2619_v52 = vld [vmem:[#allocation4 + $0xc4] sm:$0xf] }
  0x46   :  { %696 = vmatpush.bf16.msrb.mxu1 %v2139_v47  ;;  %v1975_v42 = vor.u32 %v2597_v37, %v1972_v39  ;;  %v2135_v46 = vor.u32 %v2637_v44, %v2132_v45  ;;  %v2106_v47 = vld [vmem:[#allocation4 + $0x120] sm:$0xf]  ;;  %v2060_v53 = vld [vmem:[#allocation4 + $0xc8] sm:$0xf0]  ;;  %v2635_v56 = vld [vmem:[#allocation4 + $0x144] sm:$0xf] }
  0x47   :  { %710 = vmatpush.bf16.msrb.mxu2 %v2015_v41  ;;  %673 = vmatpush.bf16.msra.mxu3 %v1971_v57  ;;  %v2068_v41 = vld [vmem:[#allocation4 + $0xd8] sm:$0xf0]  ;;  %v2107_v50 = vor.u32 %v2632_v48, %v2106_v47  ;;  %v2063_v55 = vor.u32 %v2619_v52, %v2060_v53  ;;  %v2124_v57 = vld [vmem:[#allocation4 + $0x148] sm:$0xf0]  ;;  %v2630_v60 = vld [vmem:[#allocation4 + $0x114] sm:$0xf0] }
  0x48   :  { %v2071_v43 = vor.u32 %v2621_v40, %v2068_v41  ;;  %v2617_v62 = vld [vmem:[#allocation4 + $0xb4] sm:$0xf]  ;;  %v2052_v63 = vld [vmem:[#allocation4 + $0xb8] sm:$0xf0]  ;;  %v2628_v5 = vld [vmem:[#allocation4 + $0x104] sm:$0xf0] }
  0x49   :  { %683 = vmatpush.bf16.msrb.mxu0 %v2067_v49  ;;  %v2595_v49 = vld [vmem:[#allocation4 + $0x4] sm:$0xf]  ;;  %v2116_v2 = vld [vmem:[#allocation4 + $0x138] sm:$0xf0]  ;;  %v2044_v8 = vld [vmem:[#allocation4 + $0xa8] sm:$0xf0] }
  0x4a   :  { %697 = vmatpush.bf16.msrb.mxu1 %v2131_v14  ;;  %v2615_v6 = vld [vmem:[#allocation4 + $0xa4] sm:$0xf]  ;;  %v2613_v13 = vld [vmem:[#allocation4 + $0x94] sm:$0xf]  ;;  %v2036_v14 = vld [vmem:[#allocation4 + $0x98] sm:$0xf0] }
  0x4b   :  { %711 = vmatpush.bf16.msrb.mxu2 %v2007_v51  ;;  %674 = vmatpush.bf16.msra.mxu3 %v1963_v0  ;;  %v1964_v51 = vld [vmem:[#allocation4 + $0x8] sm:$0xf0]  ;;  %v2633_v0 = vld [vmem:[#allocation4 + $0x134] sm:$0xf]  ;;  %v2631_v9 = vld [vmem:[#allocation4 + $0x124] sm:$0xf]  ;;  %v2047_v11 = vor.u32 %v2615_v6, %v2044_v8  ;;  %v2039_v16 = vor.u32 %v2613_v13, %v2036_v14 }
  0x4c   :  { %v1967_v54 = vor.u32 %v2595_v49, %v1964_v51  ;;  %v2119_v3 = vor.u32 %v2633_v0, %v2116_v2  ;;  %v2629_v15 = vld [vmem:[#allocation4 + $0x114] sm:$0xf]  ;;  %v2100_v17 = vld [vmem:[#allocation4 + $0x118] sm:$0xf0]  ;;  %v2028_v20 = vld [vmem:[#allocation4 + $0x88] sm:$0xf0] }
  0x4d   :  { %684 = vmatpush.bf16.msrb.mxu0 %v2059_v58  ;;  %v2127_v58 = vor.u32 %v2635_v56, %v2124_v57  ;;  %v2627_v21 = vld [vmem:[#allocation4 + $0x104] sm:$0xf]  ;;  %v180_v25 = vld [vmem:[%s3115_s2] sm:$0x7]  ;;  %v2650_v27 = vld [vmem:[#allocation6 + $0x38] sm:$0xff] }
  0x4e   :  { %698 = vmatpush.bf16.msrb.mxu1 %v2123_v26  ;;  %v2649_v30 = vld [vmem:[#allocation6 + $0x30] sm:$0xff]  ;;  %v182_v31 = vperm.slane %v180_v25, 0  ;;  %v184_v36 = vperm.slane %v180_v25, 2  ;;  %v2648_v52 = vld [vmem:[#allocation6 + $0x28] sm:$0xff]  ;;  %v2647_v53 = vld [vmem:[#allocation6 + $0x20] sm:$0xff] }
  0x4f   :  { %712 = vmatpush.bf16.msrb.mxu2 %v1999_v59  ;;  %723 = vmatpush.bf16.msrb.mxu3 %v2087_v19  ;;  %v2098_v59 = vld [vmem:[#allocation4 + $0x110] sm:$0xf]  ;;  %v2103_v19 = vor.u32 %v2629_v15, %v2100_v17  ;;  %v2652_v0 = vld [vmem:[#allocation6 + $0x48] sm:$0xff]  ;;  %v421_v2 = vld [vmem:[%s3117_s4] sm:$0x3] }
  0x50   :  { %v2099_v61 = vor.u32 %v2630_v60, %v2098_v59  ;;  %v2657_v56 = vld [vmem:[#allocation6 + $0x70] sm:$0xff]  ;;  %v2644_v59 = vld [vmem:[#allocation6 + $0x8] sm:$0xff]  ;;  %v2655_v60 = vld [vmem:[#allocation6 + $0x60] sm:$0xff]  ;;  %v424_v17 = vperm.slane %v421_v2, 1 }
  0x51   :  { %685 = vmatpush.bf16.msrb.mxu0 %v2051_v1  ;;  %v2055_v1 = vor.u32 %v2617_v62, %v2052_v63  ;;  %v2645_v57 = vld [vmem:[#allocation6 + $0x10] sm:$0xff]  ;;  %v2654_v62 = vld [vmem:[#allocation6 + $0x58] sm:$0xff] }
  0x52   :  { %699 = vmatpush.bf16.msrb.mxu1 %v2115_v38  ;;  %v2653_v63 = vld [vmem:[#allocation6 + $0x50] sm:$0xff] }
  0x53   :  { %713 = vmatpush.bf16.msrb.mxu2 %v1991_v18  ;;  %724 = vmatpush.bf16.msrb.mxu3 %v2079_v33  ;;  %v2611_v18 = vld [vmem:[#allocation4 + $0x84] sm:$0xf] }
  0x54   :  { %v2031_v23 = vor.u32 %v2611_v18, %v2028_v20 }
  0x55   :  { %686 = vmatpush.bf16.msrb.mxu0 %v2043_v4  ;;  %v2090_v4 = vld [vmem:[#allocation4 + $0x100] sm:$0xf] }
  0x56   :  { %700 = vmatpush.bf16.msrb.mxu1 %v2107_v50 }
  0x57   :  { %714 = vmatpush.bf16.msrb.mxu2 %v1983_v29  ;;  %725 = vmatpush.bf16.msrb.mxu3 %v2071_v43  ;;  %v183_v29 = vperm.slane %v180_v25, 1 }
  0x59   :  { %687 = vmatpush.bf16.msrb.mxu0 %v2035_v7  ;;  %v2091_v7 = vor.u32 %v2628_v5, %v2090_v4  ;;  %v423_v4 = vperm.slane %v421_v2, 0  ;;  %v2664_v2 = vld [vmem:[#allocation7 + $0x24] sm:$0xf0] }
  0x5a   :  { %701 = vmatpush.bf16.msrb.mxu1 %v2099_v61  ;;  %v2643_v61 = vld [vmem:[#allocation6] sm:$0xff] }
  0x5b   :  { %715 = vmatpush.bf16.msrb.mxu2 %v1975_v42  ;;  %726 = vmatpush.bf16.msrb.mxu3 %v2063_v55  ;;  %v2646_v55 = vld [vmem:[#allocation6 + $0x18] sm:$0xff] }
  0x5d   :  { %688 = vmatpush.bf16.msrb.mxu0 %v2027_v10  ;;  %v2108_v10 = vld [vmem:[#allocation4 + $0x128] sm:$0xf0] }
  0x5e   :  { %v2111_v12 = vor.u32 %v2631_v9, %v2108_v10  ;;  %702 = vmatpush.bf16.msrb.mxu1 %v2091_v7 }
  0x5f   :  { %716 = vmatpush.bf16.msrb.mxu2 %v1967_v54  ;;  %727 = vmatpush.bf16.msrb.mxu3 %v2055_v1  ;;  %v2658_v54 = vld [vmem:[#allocation6 + $0x78] sm:$0xff] }
  0x61   :  { %737 = vmatpush.bf16.msra.mxu0 %v2151_v22  ;;  %v2092_v22 = vld [vmem:[#allocation4 + $0x108] sm:$0xf0] }
  0x62   :  { %v2095_v24 = vor.u32 %v2627_v21, %v2092_v22  ;;  %889 = vmatpush.bf16.msra.mxu1 %v2650_v27 }
  0x63   :  { %728 = vmatpush.bf16.msrb.mxu3 %v2047_v11  ;;  %903 = vmatpush.bf16.msra.mxu2 %v2658_v54  ;;  %v2668_v54 = vld [vmem:[#allocation7 + $0x44] sm:$0xf0] }
  0x65   :  { %738 = vmatpush.bf16.msra.mxu0 %v2143_v34 }
  0x66   :  { %890 = vmatpush.bf16.msra.mxu1 %v2649_v30 }
  0x67   :  { %729 = vmatpush.bf16.msrb.mxu3 %v2039_v16  ;;  %904 = vmatpush.bf16.msra.mxu2 %v2657_v56 }
  0x69   :  { %739 = vmatpush.bf16.msra.mxu0 %v2135_v46 }
  0x6a   :  { %891 = vmatpush.bf16.msra.mxu1 %v2648_v52 }
  0x6b   :  { %730 = vmatpush.bf16.msrb.mxu3 %v2031_v23 }
  0x6d   :  { %740 = vmatpush.bf16.msra.mxu0 %v2127_v58  ;;  %v2656_v58 = vld [vmem:[#allocation6 + $0x68] sm:$0xff] }
  0x6e   :  { %892 = vmatpush.bf16.msra.mxu1 %v2647_v53  ;;  %905 = vmatpush.bf16.msra.mxu2 %v2656_v58  ;;  %v2250_v53 = vld [vmem:[#allocation7 + $0x40] sm:$0xf] }
  0x6f   :  { %v2251_v56 = vor.u32 %v2668_v54, %v2250_v53  ;;  %v2765_v53 = vld [vmem:[%s3119_s6] ss:$0 sm:$0xff]  ;;  %v2693_v54 = vld [vmem:[#allocation9 + $0x94] sm:$0xf] }
  0x71   :  { %741 = vmatpush.bf16.msra.mxu0 %v2119_v3  ;;  %v2651_v3 = vld [vmem:[#allocation6 + $0x40] sm:$0xff] }
  0x72   :  { %893 = vmatpush.bf16.msra.mxu1 %v2646_v55  ;;  %906 = vmatpush.bf16.msra.mxu2 %v2655_v60  ;;  %v2667_v55 = vld [vmem:[#allocation7 + $0x44] sm:$0xf]  ;;  %v2666_v60 = vld [vmem:[#allocation7 + $0x34] sm:$0xf0] }
  0x75   :  { %742 = vmatpush.bf16.msra.mxu0 %v2111_v12 }
  0x76   :  { %894 = vmatpush.bf16.msra.mxu1 %v2645_v57  ;;  %907 = vmatpush.bf16.msra.mxu2 %v2654_v62  ;;  %v2252_v57 = vld [vmem:[#allocation7 + $0x48] sm:$0xf0] }
  0x77   :  { %v2255_v58 = vor.u32 %v2667_v55, %v2252_v57  ;;  %v2356_v55 = vld [vmem:[#allocation9 + $0x9c] sm:$0xf0]  ;;  %v2414_v57 = vld [vmem:[#allocation9 + $0x108] sm:$0xf] }
  0x79   :  { %743 = vmatpush.bf16.msra.mxu0 %v2103_v19 }
  0x7a   :  { %895 = vmatpush.bf16.msra.mxu1 %v2644_v59  ;;  %908 = vmatpush.bf16.msra.mxu2 %v2653_v63  ;;  %v2242_v59 = vld [vmem:[#allocation7 + $0x30] sm:$0xf]  ;;  %v2244_v63 = vld [vmem:[#allocation7 + $0x38] sm:$0xf0] }
  0x7b   :  { %v2243_v62 = vor.u32 %v2666_v60, %v2242_v59  ;;  %v2359_v60 = vor.u32 %v2693_v54, %v2356_v55 }
  0x7d   :  { %744 = vmatpush.bf16.msra.mxu0 %v2095_v24 }
  0x7e   :  { %896 = vmatpush.bf16.msra.mxu1 %v2643_v61  ;;  %909 = vmatpush.bf16.msra.mxu2 %v2652_v0  ;;  %v2665_v61 = vld [vmem:[#allocation7 + $0x34] sm:$0xf] }
  0x7f   :  { %v2247_v0 = vor.u32 %v2665_v61, %v2244_v63  ;;  %v2428_v63 = vld [vmem:[#allocation9 + $0x12c] sm:$0xf0] }
  0x82   :  { %910 = vmatpush.bf16.msra.mxu2 %v2651_v3  ;;  %v2663_v3 = vld [vmem:[#allocation7 + $0x24] sm:$0xf] }
  0xbd   :  { %v331_v26 = vpop.f32.mrf.mxu0 }
  0xbe   :  { %v345_v28 = vpop.f32.mrf.mxu1  ;;  %v332_v33 = vadd.f32 %v331_v26, %v182_v31 }
  0xbf   :  { %v346_v32 = vadd.f32 %v345_v28, %v183_v29 }
  0xc0   :  { %v364_v41 = vmax.f32 %v332_v33, 0.0 }
  0xc1   :  { %v365_v39 = vmax.f32 %v346_v32, 0.0 }
  0xc5   :  { %v359_v34 = vpop.f32.mrf.mxu2  ;;  %v333_v35 = vpop.f32.mrf.mxu0 }
  0xc6   :  { %v334_v37 = vadd.f32 %v333_v35, %v182_v31  ;;  %v347_v38 = vpop.f32.mrf.mxu1  ;;  %v360_v44 = vadd.f32 %v359_v34, %v184_v36  ;;  %v2274_v35 = vld [vmem:[#allocation7 + $0x70] sm:$0xf] }
  0xc7   :  { %v348_v40 = vadd.f32 %v347_v38, %v183_v29 }
  0xc8   :  { %v367_v42 = vmax.f32 %v334_v37, 0.0  ;;  %v366_v48 = vmax.f32 %v360_v44, 0.0  ;;  %v2673_v37 = vld [vmem:[#allocation7 + $0x74] sm:$0xf] }
  0xc9   :  { %v368_v43 = vmax.f32 %v348_v40, 0.0 }
  0xca   :  { %v370_v45 = vpack.c.bf16 %v367_v42, %v364_v41  ;;  %v2266_v41 = vld [vmem:[#allocation7 + $0x60] sm:$0xf]  ;;  %v2672_v42 = vld [vmem:[#allocation7 + $0x64] sm:$0xf0] }
  0xcb   :  { %v371_v46 = vpack.c.bf16 %v368_v43, %v365_v39  ;;  %v2276_v39 = vld [vmem:[#allocation7 + $0x78] sm:$0xf0]  ;;  %v2671_v43 = vld [vmem:[#allocation7 + $0x64] sm:$0xf]  ;;  %v2267_v44 = vor.u32 %v2672_v42, %v2266_v41 }
  0xcc   :  { %675 = vmatmul.bf16.vlgmr.msra.gmra.mxu3 %v370_v45  ;;  %717 = vmatmul.bf16.vlgmr.msrb.gmra.mxu2 %v370_v45  ;;  %v2279_v40 = vor.u32 %v2673_v37, %v2276_v39  ;;  %v2268_v45 = vld [vmem:[#allocation7 + $0x68] sm:$0xf0]  ;;  %v2691_v37 = vld [vmem:[#allocation9 + $0x80] sm:$0xf0]  ;;  %v2452_v39 = vld [vmem:[#allocation9 + $0x15c] sm:$0xf0] }
  0xcd   :  { %v361_v47 = vpop.f32.mrf.mxu2  ;;  %689 = vmatmul.bf16.vlgmr.msrb.gmra.mxu0 %v371_v46 }
  0xce   :  { %v362_v49 = vadd.f32 %v361_v47, %v184_v36  ;;  %v2674_v36 = vld [vmem:[#allocation7 + $0x74] sm:$0xf0]  ;;  %1045 = vmatpush.bf16.msrb.mxu0 %v2279_v40 }
  0xcf   :  { %v2275_v38 = vor.u32 %v2674_v36, %v2274_v35  ;;  %v2670_v47 = vld [vmem:[#allocation7 + $0x54] sm:$0xf0] }
  0xd0   :  { %v369_v50 = vmax.f32 %v362_v49, 0.0  ;;  %v2669_v49 = vld [vmem:[#allocation7 + $0x54] sm:$0xf]  ;;  %v2342_v36 = vld [vmem:[#allocation9 + $0x78] sm:$0xf] }
  0xd1   :  { %1031 = vmatpush.bf16.msra.mxu3 %v2275_v38  ;;  %v2717_v38 = vld [vmem:[#allocation9 + $0x154] sm:$0xf] }
  0xd2   :  { %v372_v51 = vpack.c.bf16 %v369_v50, %v366_v48  ;;  %v2271_v48 = vor.u32 %v2671_v43, %v2268_v45  ;;  %v2260_v50 = vld [vmem:[#allocation7 + $0x58] sm:$0xf0]  ;;  %v2455_v42 = vor.u32 %v2717_v38, %v2452_v39  ;;  %v2696_v43 = vld [vmem:[#allocation9 + $0xac] sm:$0xf]  ;;  %v2426_v45 = vld [vmem:[#allocation9 + $0x120] sm:$0xf] }
  0xd3   :  { %v2263_v52 = vor.u32 %v2669_v49, %v2260_v50  ;;  %v2714_v49 = vld [vmem:[#allocation9 + $0x13c] sm:$0xf]  ;;  %v2330_v50 = vld [vmem:[#allocation9 + $0x60] sm:$0xf] }
  0xd4   :  { %703 = vmatmul.bf16.vlgmr.msrb.gmra.mxu1 %v372_v51  ;;  %1046 = vmatpush.bf16.msrb.mxu0 %v2271_v48  ;;  %v2722_v39 = vld [vmem:[#allocation9 + $0x178] sm:$0xf0] }
  0xd5   :  { %1032 = vmatpush.bf16.msra.mxu3 %v2267_v44  ;;  %v2368_v44 = vld [vmem:[#allocation9 + $0xb4] sm:$0xf0] }
  0xd6   :  { %v2371_v48 = vor.u32 %v2696_v43, %v2368_v44  ;;  %v2687_v44 = vld [vmem:[#allocation9 + $0x64] sm:$0xf] }
  0xd8   :  { %1047 = vmatpush.bf16.msrb.mxu0 %v2263_v52  ;;  %v2440_v52 = vld [vmem:[#allocation9 + $0x144] sm:$0xf0] }
  0xd9   :  { %v2443_v59 = vor.u32 %v2714_v49, %v2440_v52  ;;  %v2458_v49 = vld [vmem:[#allocation9 + $0x158] sm:$0xf]  ;;  %v2282_v52 = vld [vmem:[#allocation9] sm:$0xf] }
  0xdc   :  { %731 = vmatmul.bf16.vlgmr.msrb.gmra.mxu3 %v371_v46  ;;  %v2258_v46 = vld [vmem:[#allocation7 + $0x50] sm:$0xf]  ;;  %1048 = vmatpush.bf16.msrb.mxu0 %v2255_v58  ;;  %v2709_v58 = vld [vmem:[#allocation9 + $0x110] sm:$0xf0] }
  0xdd   :  { %745 = vmatmul.bf16.vlgmr.msra.gmra.mxu0 %v372_v51  ;;  %v2259_v51 = vor.u32 %v2670_v47, %v2258_v46  ;;  %v2712_v46 = vld [vmem:[#allocation9 + $0x128] sm:$0xf0]  ;;  %v2343_v47 = vor.u32 %v2691_v37, %v2342_v36  ;;  %v2416_v36 = vld [vmem:[#allocation9 + $0x114] sm:$0xf0]  ;;  %v2470_v37 = vld [vmem:[#allocation9 + $0x170] sm:$0xf] }
  0xdf   :  { %1033 = vmatpush.bf16.msra.mxu3 %v2259_v51  ;;  %v2688_v51 = vld [vmem:[#allocation9 + $0x68] sm:$0xf0] }
  0xe0   :  { %1049 = vmatpush.bf16.msrb.mxu0 %v2247_v0  ;;  %v2331_v61 = vor.u32 %v2688_v51, %v2330_v50  ;;  %v2690_v0 = vld [vmem:[#allocation9 + $0x7c] sm:$0xf]  ;;  %v2719_v51 = vld [vmem:[#allocation9 + $0x160] sm:$0xf0] }
  0xe1   :  { %v2459_v54 = vor.u32 %v2719_v51, %v2458_v49  ;;  %v2290_v49 = vld [vmem:[#allocation9 + $0x8] sm:$0xf]  ;;  %v939_v51 = vld [vmem:[%s3121_s8] sm:$0x3] }
  0xe3   :  { %1034 = vmatpush.bf16.msra.mxu3 %v2251_v56  ;;  %v2427_v56 = vor.u32 %v2712_v46, %v2426_v45  ;;  %v2332_v45 = vld [vmem:[#allocation9 + $0x6c] sm:$0xf0] }
  0xe4   :  { %v2335_v46 = vor.u32 %v2687_v44, %v2332_v45  ;;  %v2302_v45 = vld [vmem:[#allocation9 + $0x20] sm:$0xf] }
  0xe7   :  { %1035 = vmatpush.bf16.msra.mxu3 %v2243_v62  ;;  %v2711_v62 = vld [vmem:[#allocation9 + $0x124] sm:$0xf] }
 0x14a   :  { %v690_v1 = vpop.f32.mrf.mxu0 }
 0x14f   :  { %v676_v5 = vpop.f32.mrf.mxu3  ;;  %v718_v12 = vpop.f32.mrf.mxu2 }
 0x150   :  { %v677_v7 = vadd.f32 %v676_v5, %v423_v4  ;;  %v719_v23 = vadd.f32 %v718_v12, %v424_v17  ;;  %v2236_v5 = vld [vmem:[#allocation7 + $0x28] sm:$0xf0] }
 0x151   :  { %v704_v6 = vpop.f32.mrf.mxu1 }
 0x152   :  { %v692_v8 = vpop.f32.mrf.mxu0  ;;  %v691_v9 = vadd.f32 %v690_v1, %v677_v7  ;;  %v2234_v1 = vld [vmem:[#allocation7 + $0x20] sm:$0xf]  ;;  %v2226_v7 = vld [vmem:[#allocation7 + $0x10] sm:$0xf] }
 0x154   :  { %v705_v13 = vadd.f32 %v704_v6, %v691_v9  ;;  %v2239_v6 = vor.u32 %v2663_v3, %v2236_v5  ;;  %v2661_v9 = vld [vmem:[#allocation7 + $0x14] sm:$0xf] }
 0x155   :  { %v2685_v3 = vld [vmem:[#allocation9 + $0x50] sm:$0xf0] }
 0x156   :  { %v751_v18 = vmax.f32 %v705_v13, 0.0  ;;  %1050 = vmatpush.bf16.msrb.mxu0 %v2239_v6  ;;  %v2218_v13 = vld [vmem:[#allocation7] sm:$0xf] }
 0x157   :  { %v678_v10 = vpop.f32.mrf.mxu3  ;;  %v720_v24 = vpop.f32.mrf.mxu2 }
 0x158   :  { %v679_v11 = vadd.f32 %v678_v10, %v423_v4  ;;  %v721_v26 = vadd.f32 %v720_v24, %v424_v17  ;;  %v2235_v4 = vor.u32 %v2664_v2, %v2234_v1  ;;  %v2220_v17 = vld [vmem:[#allocation7 + $0x8] sm:$0xf0]  ;;  %v2366_v24 = vld [vmem:[#allocation9 + $0xa8] sm:$0xf] }
 0x159   :  { %v706_v15 = vpop.f32.mrf.mxu1  ;;  %v2318_v2 = vld [vmem:[#allocation9 + $0x48] sm:$0xf] }
 0x15a   :  { %v693_v14 = vadd.f32 %v692_v8, %v679_v11  ;;  %v746_v20 = vpop.f32.mrf.mxu0  ;;  %1036 = vmatpush.bf16.msra.mxu3 %v2235_v4  ;;  %v2662_v8 = vld [vmem:[#allocation7 + $0x14] sm:$0xf0]  ;;  %v2228_v11 = vld [vmem:[#allocation7 + $0x18] sm:$0xf0]  ;;  %v2344_v4 = vld [vmem:[#allocation9 + $0x84] sm:$0xf0] }
 0x15b   :  { %v2227_v10 = vor.u32 %v2662_v8, %v2226_v7  ;;  %v2231_v12 = vor.u32 %v2661_v9, %v2228_v11  ;;  %v2347_v6 = vor.u32 %v2690_v0, %v2344_v4  ;;  %v2415_v7 = vor.u32 %v2709_v58, %v2414_v57  ;;  %v2706_v11 = vld [vmem:[#allocation9 + $0xf8] sm:$0xf0]  ;;  %v2320_v57 = vld [vmem:[#allocation9 + $0x54] sm:$0xf0]  ;;  %v2446_v0 = vld [vmem:[#allocation9 + $0x140] sm:$0xf] }
 0x15c   :  { %v707_v16 = vadd.f32 %v706_v15, %v693_v14  ;;  %v2660_v14 = vld [vmem:[#allocation7 + $0x4] sm:$0xf0]  ;;  %v2659_v15 = vld [vmem:[#allocation7 + $0x4] sm:$0xf]  ;;  %v2431_v8 = vor.u32 %v2711_v62, %v2428_v63  ;;  %v2702_v62 = vld [vmem:[#allocation9 + $0xdc] sm:$0xf] }
 0x15d   :  { %1051 = vmatpush.bf16.msrb.mxu0 %v2231_v12  ;;  %v2319_v12 = vor.u32 %v2685_v3, %v2318_v2  ;;  %v2392_v63 = vld [vmem:[#allocation9 + $0xe4] sm:$0xf0]  ;;  %v2716_v2 = vld [vmem:[#allocation9 + $0x148] sm:$0xf0]  ;;  %v2681_v4 = vld [vmem:[#allocation9 + $0x34] sm:$0xf] }
 0x15e   :  { %v753_v19 = vmax.f32 %v707_v16, 0.0  ;;  %1037 = vmatpush.bf16.msra.mxu3 %v2227_v10  ;;  %v2219_v16 = vor.u32 %v2660_v14, %v2218_v13  ;;  %v2402_v10 = vld [vmem:[#allocation9 + $0xf0] sm:$0xf]  ;;  %v2447_v3 = vor.u32 %v2716_v2, %v2446_v0 }
 0x15f   :  { %v732_v21 = vpop.f32.mrf.mxu3  ;;  %v2306_v14 = vld [vmem:[#allocation9 + $0x30] sm:$0xf] }
 0x160   :  { %v755_v22 = vpack.c.bf16 %v753_v19, %v751_v18  ;;  %v733_v25 = vadd.f32 %v732_v21, %v719_v23  ;;  %v2223_v18 = vor.u32 %v2659_v15, %v2220_v17  ;;  %v2462_v19 = vld [vmem:[#allocation9 + $0x168] sm:$0xf]  ;;  %v2450_v21 = vld [vmem:[#allocation9 + $0x150] sm:$0xf]  ;;  %v2718_v23 = vld [vmem:[#allocation9 + $0x158] sm:$0xf0] }
 0x161   :  { %v2682_v15 = vld [vmem:[#allocation9 + $0x38] sm:$0xf0] }
 0x162   :  { %897 = vmatmul.bf16.vlgmr.msra.gmra.mxu1 %v755_v22  ;;  %v747_v28 = vadd.f32 %v746_v20, %v733_v25  ;;  %v748_v30 = vpop.f32.mrf.mxu0  ;;  %1038 = vmatpush.bf16.msra.mxu3 %v2219_v16  ;;  %v2721_v20 = vld [vmem:[#allocation9 + $0x170] sm:$0xf0]  ;;  %v2403_v16 = vor.u32 %v2706_v11, %v2402_v10  ;;  %v2699_v10 = vld [vmem:[#allocation9 + $0xc4] sm:$0xf]  ;;  %v2380_v11 = vld [vmem:[#allocation9 + $0xcc] sm:$0xf0] }
 0x163   :  { %1052 = vmatpush.bf16.msrb.mxu0 %v2223_v18  ;;  %v2463_v22 = vor.u32 %v2721_v20, %v2462_v19  ;;  %v2697_v25 = vld [vmem:[#allocation9 + $0xb0] sm:$0xf0]  ;;  %v2390_v19 = vld [vmem:[#allocation9 + $0xd8] sm:$0xf]  ;;  %v2703_v20 = vld [vmem:[#allocation9 + $0xe0] sm:$0xf0] }
 0x164   :  { %v752_v32 = vmax.f32 %v747_v28, 0.0  ;;  %v2451_v28 = vor.u32 %v2718_v23, %v2450_v21  ;;  %v2307_v21 = vor.u32 %v2682_v15, %v2306_v14  ;;  %v2713_v14 = vld [vmem:[#allocation9 + $0x130] sm:$0xf0] }
 0x165   :  { %1407 = vmatpush.bf16.msrb.mxu2 %v2463_v22 }
 0x166   :  { %1421 = vmatpush.bf16.msrb.mxu3 %v2371_v48  ;;  %v2404_v48 = vld [vmem:[#allocation9 + $0xfc] sm:$0xf0] }
 0x167   :  { %v734_v27 = vpop.f32.mrf.mxu3 }
 0x168   :  { %v735_v29 = vadd.f32 %v734_v27, %v721_v26  ;;  %v2367_v26 = vor.u32 %v2697_v25, %v2366_v24  ;;  %v2354_v27 = vld [vmem:[#allocation9 + $0x90] sm:$0xf]  ;;  %v2391_v24 = vor.u32 %v2703_v20, %v2390_v19  ;;  %v2692_v20 = vld [vmem:[#allocation9 + $0x88] sm:$0xf0] }
 0x169   :  { %1408 = vmatpush.bf16.msrb.mxu2 %v2451_v28  ;;  %v2700_v28 = vld [vmem:[#allocation9 + $0xc8] sm:$0xf0] }
 0x16a   :  { %v749_v31 = vadd.f32 %v748_v30, %v735_v29  ;;  %v2438_v29 = vld [vmem:[#allocation9 + $0x138] sm:$0xf]  ;;  %v2694_v30 = vld [vmem:[#allocation9 + $0x98] sm:$0xf0]  ;;  %1393 = vmatpush.bf16.msrb.mxu1 %v2367_v26  ;;  %1422 = vmatpush.bf16.msrb.mxu3 %v2359_v60 }
 0x16b   :  { %v2698_v60 = vld [vmem:[#allocation9 + $0xb8] sm:$0xf0] }
 0x16c   :  { %v754_v33 = vmax.f32 %v749_v31, 0.0  ;;  %v2715_v31 = vld [vmem:[#allocation9 + $0x140] sm:$0xf0] }
 0x16d   :  { %v2439_v41 = vor.u32 %v2715_v31, %v2438_v29 }
 0x16e   :  { %v756_v34 = vpack.c.bf16 %v754_v33, %v752_v32  ;;  %v2355_v32 = vor.u32 %v2694_v30, %v2354_v27  ;;  %v2720_v33 = vld [vmem:[#allocation9 + $0x16c] sm:$0xf]  ;;  %1423 = vmatpush.bf16.msrb.mxu3 %v2347_v6  ;;  %v2378_v27 = vld [vmem:[#allocation9 + $0xc0] sm:$0xf]  ;;  %v2362_v6 = vld [vmem:[#allocation9 + $0x98] sm:$0xf] }
 0x16f   :  { %1409 = vmatpush.bf16.msrb.mxu2 %v2439_v41  ;;  %v2379_v31 = vor.u32 %v2700_v28, %v2378_v27  ;;  %v2679_v41 = vld [vmem:[#allocation9 + $0x20] sm:$0xf0]  ;;  %v2338_v27 = vld [vmem:[#allocation9 + $0x68] sm:$0xf] }
 0x170   :  { %911 = vmatmul.bf16.vlgmr.msra.gmra.mxu2 %v756_v34  ;;  %v2464_v34 = vld [vmem:[#allocation9 + $0x174] sm:$0xf0]  ;;  %1394 = vmatpush.bf16.msrb.mxu1 %v2355_v32 }
 0x171   :  { %v2467_v35 = vor.u32 %v2720_v33, %v2464_v34 }
 0x172   :  { %1424 = vmatpush.bf16.msrb.mxu3 %v2335_v46  ;;  %v2680_v46 = vld [vmem:[#allocation9 + $0x28] sm:$0xf0] }
 0x173   :  { %1435 = vmatpush.bf16.msra.mxu0 %v2467_v35  ;;  %1410 = vmatpush.bf16.msrb.mxu2 %v2427_v56  ;;  %v2708_v35 = vld [vmem:[#allocation9 + $0x10c] sm:$0xf] }
 0x174   :  { %1395 = vmatpush.bf16.msrb.mxu1 %v2343_v47  ;;  %v2419_v38 = vor.u32 %v2708_v35, %v2416_v36  ;;  %v2705_v47 = vld [vmem:[#allocation9 + $0xf4] sm:$0xf]  ;;  %v2684_v56 = vld [vmem:[#allocation9 + $0x4c] sm:$0xf]  ;;  %v2686_v35 = vld [vmem:[#allocation9 + $0x58] sm:$0xf0] }
 0x175   :  { %v2407_v50 = vor.u32 %v2705_v47, %v2404_v48  ;;  %v2323_v58 = vor.u32 %v2684_v56, %v2320_v57  ;;  %v2303_v48 = vor.u32 %v2680_v46, %v2302_v45  ;;  %v2738_v56 = vld [vmem:[#allocation10 + $0x78] sm:$0xff] }
 0x177   :  { %1436 = vmatpush.bf16.msra.mxu0 %v2455_v42  ;;  %1411 = vmatpush.bf16.msrb.mxu2 %v2415_v7  ;;  %v2471_v42 = vor.u32 %v2722_v39, %v2470_v37  ;;  %v2398_v37 = vld [vmem:[#allocation9 + $0xe0] sm:$0xf]  ;;  %v2314_v39 = vld [vmem:[#allocation9 + $0x38] sm:$0xf] }
 0x178   :  { %1396 = vmatpush.bf16.msrb.mxu1 %v2331_v61  ;;  %1425 = vmatpush.bf16.msrb.mxu3 %v2323_v58 }
 0x17b   :  { %1437 = vmatpush.bf16.msra.mxu0 %v2443_v59  ;;  %1412 = vmatpush.bf16.msrb.mxu2 %v2403_v16  ;;  %v2374_v59 = vld [vmem:[#allocation9 + $0xb0] sm:$0xf]  ;;  %v2678_v16 = vld [vmem:[#allocation9 + $0x1c] sm:$0xf] }
 0x17c   :  { %1397 = vmatpush.bf16.msrb.mxu1 %v2319_v12  ;;  %v2375_v61 = vor.u32 %v2698_v60, %v2374_v59  ;;  %v2434_v12 = vld [vmem:[#allocation9 + $0x128] sm:$0xf]  ;;  %v2729_v59 = vld [vmem:[#allocation10 + $0x30] sm:$0xff] }
 0x17d   :  { %v2435_v15 = vor.u32 %v2713_v14, %v2434_v12  ;;  %v2726_v12 = vld [vmem:[#allocation10 + $0x18] sm:$0xff]  ;;  %v2735_v14 = vld [vmem:[#allocation10 + $0x60] sm:$0xff] }
 0x17f   :  { %1438 = vmatpush.bf16.msra.mxu0 %v2431_v8  ;;  %1413 = vmatpush.bf16.msrb.mxu2 %v2391_v24  ;;  %v2695_v8 = vld [vmem:[#allocation9 + $0xa0] sm:$0xf0] }
 0x180   :  { %1398 = vmatpush.bf16.msrb.mxu1 %v2307_v21 }
 0x183   :  { %1414 = vmatpush.bf16.msrb.mxu2 %v2379_v31  ;;  %1439 = vmatpush.bf16.msra.mxu0 %v2419_v38  ;;  %v2410_v31 = vld [vmem:[#allocation9 + $0xf8] sm:$0xf]  ;;  %v2704_v38 = vld [vmem:[#allocation9 + $0xe8] sm:$0xf0] }
 0x187   :  { %1463 = vmatpush.bf16.msra.mxu2 %v2471_v42  ;;  %1440 = vmatpush.bf16.msra.mxu0 %v2407_v50  ;;  %v2386_v42 = vld [vmem:[#allocation9 + $0xc8] sm:$0xf]  ;;  %v2677_v50 = vld [vmem:[#allocation9 + $0x10] sm:$0xf0] }
 0x18b   :  { %1464 = vmatpush.bf16.msra.mxu2 %v2459_v54  ;;  %v942_v54 = vperm.slane %v939_v51, 1 }
 0x18f   :  { %1465 = vmatpush.bf16.msra.mxu2 %v2447_v3 }
 0x193   :  { %1466 = vmatpush.bf16.msra.mxu2 %v2435_v15  ;;  %v2725_v15 = vld [vmem:[#allocation10 + $0x10] sm:$0xff] }
 0x1df   :  { %v898_v40 = vpop.f32.mrf.mxu1 }
 0x1e0   :  { %v899_v5 = vadd.f32 %v2765_v53, %v898_v40  ;;  %v2294_v40 = vld [vmem:[#allocation9 + $0x18] sm:$0xf] }
 0x1e1   :  { %v2295_v43 = vor.u32 %v2679_v41, %v2294_v40  ;;  %v2399_v40 = vor.u32 %v2704_v38, %v2398_v37  ;;  %v2683_v41 = vld [vmem:[#allocation9 + $0x40] sm:$0xf0] }
 0x1e2   :  { %v2315_v44 = vor.u32 %v2683_v41, %v2314_v39 }
 0x1e3   :  { %1399 = vmatpush.bf16.msrb.mxu1 %v2295_v43  ;;  %v2701_v43 = vld [vmem:[#allocation9 + $0xd0] sm:$0xf0] }
 0x1e4   :  { %v2387_v47 = vor.u32 %v2701_v43, %v2386_v42 }
 0x1e7   :  { %v900_v13 = vpop.f32.mrf.mxu1 }
 0x1e8   :  { %v901_v17 = vadd.f32 %v2765_v53, %v900_v13  ;;  %v2676_v53 = vld [vmem:[#allocation9 + $0x8] sm:$0xf0]  ;;  %v2383_v13 = vor.u32 %v2699_v10, %v2380_v11  ;;  %v2727_v10 = vld [vmem:[#allocation10 + $0x20] sm:$0xff] }
 0x1e9   :  { %v2283_v55 = vor.u32 %v2676_v53, %v2282_v52  ;;  %v2291_v53 = vor.u32 %v2677_v50, %v2290_v49  ;;  %v2736_v11 = vld [vmem:[#allocation10 + $0x68] sm:$0xff] }
 0x1eb   :  { %1400 = vmatpush.bf16.msrb.mxu1 %v2283_v55  ;;  %v2730_v55 = vld [vmem:[#allocation10 + $0x38] sm:$0xff] }
 0x1ef   :  { %1449 = vmatpush.bf16.msra.mxu1 %v2375_v61  ;;  %v941_v61 = vperm.slane %v939_v51, 0 }
 0x1f3   :  { %v912_v1 = vpop.f32.mrf.mxu2 }
 0x1f4   :  { %v913_v9 = vadd.f32 %v912_v1, %v899_v5  ;;  %v2395_v1 = vor.u32 %v2702_v62, %v2392_v63  ;;  %v2308_v5 = vld [vmem:[#allocation9 + $0x3c] sm:$0xf0] }
 0x1f5   :  { %v2311_v7 = vor.u32 %v2681_v4, %v2308_v5 }
 0x1f6   :  { %v917_v18 = vmax.f32 %v913_v9, 0.0  ;;  %1441 = vmatpush.bf16.msra.mxu0 %v2395_v1  ;;  %v2363_v9 = vor.u32 %v2695_v8, %v2362_v6  ;;  %v2728_v8 = vld [vmem:[#allocation10 + $0x28] sm:$0xff] }
 0x1f7   :  { %1426 = vmatpush.bf16.msrb.mxu3 %v2311_v7 }
 0x1f8   :  { %v919_v25 = vpack.c.bf16 %v917_v18, %v917_v18  ;;  %1450 = vmatpush.bf16.msra.mxu1 %v2363_v9  ;;  %v2737_v9 = vld [vmem:[#allocation10 + $0x70] sm:$0xff] }
 0x1fa   :  { %v947_v32 = vunpack.c.l.b16 %v919_v25  ;;  %1442 = vmatpush.bf16.msra.mxu0 %v2383_v13  ;;  %v2675_v25 = vld [vmem:[#allocation9 + $0x4] sm:$0xf]  ;;  %v2746_v13 = vld [vmem:[#allocation10 + $0xb8] sm:$0xff] }
 0x1fb   :  { %v914_v22 = vpop.f32.mrf.mxu2 }
 0x1fc   :  { %v915_v23 = vadd.f32 %v914_v22, %v901_v17  ;;  %v2296_v17 = vld [vmem:[#allocation9 + $0x24] sm:$0xf0]  ;;  %v2422_v22 = vld [vmem:[#allocation9 + $0x110] sm:$0xf] }
 0x1fd   :  { %v2299_v19 = vor.u32 %v2678_v16, %v2296_v17  ;;  %v2745_v16 = vld [vmem:[#allocation10 + $0xb0] sm:$0xff]  ;;  %v2734_v17 = vld [vmem:[#allocation10 + $0x58] sm:$0xff] }
 0x1fe   :  { %v918_v26 = vmax.f32 %v915_v23, 0.0  ;;  %v2710_v23 = vld [vmem:[#allocation9 + $0x118] sm:$0xf0] }
 0x1ff   :  { %1427 = vmatpush.bf16.msrb.mxu3 %v2299_v19  ;;  %v2423_v24 = vor.u32 %v2710_v23, %v2422_v22  ;;  %v2744_v19 = vld [vmem:[#allocation10 + $0xa8] sm:$0xff]  ;;  %v2743_v22 = vld [vmem:[#allocation10 + $0xa0] sm:$0xff] }
 0x200   :  { %v920_v29 = vpack.c.bf16 %v918_v26, %v918_v26  ;;  %v2750_v30 = vpack.c.bf16 %v918_v26, %v917_v18  ;;  %v2350_v18 = vld [vmem:[#allocation9 + $0x80] sm:$0xf]  ;;  %v2284_v26 = vld [vmem:[#allocation9 + $0xc] sm:$0xf0]  ;;  %v2732_v23 = vld [vmem:[#allocation10 + $0x48] sm:$0xff] }
 0x201   :  { %v2351_v21 = vor.u32 %v2692_v20, %v2350_v18  ;;  %v2287_v28 = vor.u32 %v2675_v25, %v2284_v26  ;;  %1467 = vmatpush.bf16.msra.mxu2 %v2423_v24  ;;  %v2724_v18 = vld [vmem:[#allocation10 + $0x8] sm:$0xff]  ;;  %v2733_v20 = vld [vmem:[#allocation10 + $0x50] sm:$0xff]  ;;  %v2742_v24 = vld [vmem:[#allocation10 + $0x98] sm:$0xff] }
 0x202   :  { %2751 = vst [vmem:[%s3129_s16] sm:$0xff] %v2750_v30   ;;  %v948_v33 = vunpack.c.l.b16 %v920_v29  ;;  %v2689_v29 = vld [vmem:[#allocation9 + $0x70] sm:$0xf0]  ;;  %v2731_v25 = vld [vmem:[#allocation10 + $0x40] sm:$0xff] }
 0x203   :  { %1451 = vmatpush.bf16.msra.mxu1 %v2351_v21  ;;  %v2339_v30 = vor.u32 %v2689_v29, %v2338_v27  ;;  %1428 = vmatpush.bf16.msrb.mxu3 %v2287_v28  ;;  %v2723_v21 = vld [vmem:[#allocation10] sm:$0xff]  ;;  %v2741_v26 = vld [vmem:[#allocation10 + $0x90] sm:$0xff]  ;;  %v2740_v27 = vld [vmem:[#allocation10 + $0x88] sm:$0xff] }
 0x204   :  { %v949_v34 = vpack.c.b16 %v948_v33, %v947_v32  ;;  %v2707_v32 = vld [vmem:[#allocation9 + $0x100] sm:$0xf0]  ;;  %v1129_v29 = vld [vmem:[%s3123_s10] sm:$0x7] }
 0x205   :  { %v2411_v33 = vor.u32 %v2707_v32, %v2410_v31  ;;  %v2739_v28 = vld [vmem:[#allocation10 + $0x80] sm:$0xff]  ;;  %v1131_v32 = vperm.slane %v1129_v29, 0 }
 0x206   :  { %1039 = vmatmul.bf16.vlgmr.msra.gmra.mxu3 %v949_v34  ;;  %1053 = vmatmul.bf16.vlgmr.msrb.gmra.mxu0 %v949_v34  ;;  %v2326_v34 = vld [vmem:[#allocation9 + $0x50] sm:$0xf] }
 0x207   :  { %1452 = vmatpush.bf16.msra.mxu1 %v2339_v30  ;;  %v2327_v36 = vor.u32 %v2686_v35, %v2326_v34  ;;  %1468 = vmatpush.bf16.msra.mxu2 %v2411_v33 }
 0x208   :  { %1682 = vmatpush.bf16.msra.mxu3 %v2730_v55  ;;  %1696 = vmatpush.bf16.msrb.mxu0 %v2738_v56 }
 0x20b   :  { %1453 = vmatpush.bf16.msra.mxu1 %v2327_v36  ;;  %1469 = vmatpush.bf16.msra.mxu2 %v2399_v40  ;;  %v1132_v36 = vperm.slane %v1129_v29, 1 }
 0x20c   :  { %1683 = vmatpush.bf16.msra.mxu3 %v2729_v59  ;;  %1697 = vmatpush.bf16.msrb.mxu0 %v2737_v9 }
 0x20f   :  { %1454 = vmatpush.bf16.msra.mxu1 %v2315_v44  ;;  %1470 = vmatpush.bf16.msra.mxu2 %v2387_v47 }
 0x210   :  { %1684 = vmatpush.bf16.msra.mxu3 %v2728_v8  ;;  %1698 = vmatpush.bf16.msrb.mxu0 %v2736_v11 }
 0x213   :  { %1455 = vmatpush.bf16.msra.mxu1 %v2303_v48 }
 0x214   :  { %1685 = vmatpush.bf16.msra.mxu3 %v2727_v10  ;;  %1699 = vmatpush.bf16.msrb.mxu0 %v2735_v14 }
 0x217   :  { %1456 = vmatpush.bf16.msra.mxu1 %v2291_v53  ;;  %v1133_v53 = vperm.slane %v1129_v29, 2 }
 0x218   :  { %1686 = vmatpush.bf16.msra.mxu3 %v2726_v12  ;;  %1700 = vmatpush.bf16.msrb.mxu0 %v2734_v17 }
 0x21c   :  { %1687 = vmatpush.bf16.msra.mxu3 %v2725_v15  ;;  %1701 = vmatpush.bf16.msrb.mxu0 %v2733_v20 }
 0x220   :  { %1688 = vmatpush.bf16.msra.mxu3 %v2724_v18  ;;  %1702 = vmatpush.bf16.msrb.mxu0 %v2732_v23 }
 0x224   :  { %1689 = vmatpush.bf16.msra.mxu3 %v2723_v21  ;;  %1703 = vmatpush.bf16.msrb.mxu0 %v2731_v25 }
 0x283   :  { %v1054_v52 = vpop.f32.mrf.mxu0 }
 0x284   :  { %v1055_v58 = vadd.f32 %v1054_v52, %v942_v54 }
 0x286   :  { %v1060_v63 = vmax.f32 %v1055_v58, 0.0 }
 0x289   :  { %v1040_v57 = vpop.f32.mrf.mxu3 }
 0x28a   :  { %v1041_v1 = vadd.f32 %v1040_v57, %v941_v61 }
 0x28b   :  { %v1056_v60 = vpop.f32.mrf.mxu0 }
 0x28c   :  { %v1057_v62 = vadd.f32 %v1056_v60, %v942_v54  ;;  %v1059_v5 = vmax.f32 %v1041_v1, 0.0 }
 0x28e   :  { %v1062_v0 = vmax.f32 %v1057_v62, 0.0 }
 0x290   :  { %v1064_v2 = vpack.c.bf16 %v1062_v0, %v1060_v63 }
 0x291   :  { %v1042_v3 = vpop.f32.mrf.mxu3 }
 0x292   :  { %v1043_v4 = vadd.f32 %v1042_v3, %v941_v61  ;;  %1415 = vmatmul.bf16.vlgmr.msrb.gmra.mxu2 %v1064_v2  ;;  %1443 = vmatmul.bf16.vlgmr.msra.gmra.mxu0 %v1064_v2 }
 0x294   :  { %v1061_v6 = vmax.f32 %v1043_v4, 0.0  ;;  %v2766_v4 = vld [vmem:[%s3125_s12] ss:$0 sm:$0xff] }
 0x296   :  { %v1063_v7 = vpack.c.bf16 %v1061_v6, %v1059_v5  ;;  %v2943_v5 = vmov 0  }
 0x298   :  { %1401 = vmatmul.bf16.vlgmr.msrb.gmra.mxu1 %v1063_v7  ;;  %1429 = vmatmul.bf16.vlgmr.msrb.gmra.mxu3 %v1063_v7 }
 0x299   :  { %1710 = vmatpush.bf16.msrb.mxu1 %v2746_v13 }
 0x29d   :  { %1711 = vmatpush.bf16.msrb.mxu1 %v2745_v16 }
 0x2a1   :  { %1712 = vmatpush.bf16.msrb.mxu1 %v2744_v19 }
 0x2a2   :  { %1471 = vmatmul.bf16.vlgmr.msra.gmra.mxu2 %v1064_v2  ;;  %v1725_v2 = vld [vmem:[%s3127_s14] sm:$0xff] }
 0x2a3   :  { %1796 = vmatpush.xpose.msrb.mxu2 %v1725_v2  ;;  %1826 = vmatpush.msrb.mxu3 %v1725_v2  ;;  %vm1734_vm0 = vcmp.gt.f32.partialorder %v1725_v2, 0.5 }
 0x2a4   :  { %v1735_v6 = vsel %vm1734_vm0, 1, %v2943_v5 }
 0x2a5   :  { %1713 = vmatpush.bf16.msrb.mxu1 %v2743_v22  ;;  %v1736_v9 = vperm.slane %v1735_v6, 0  ;;  %v1749_v16 = vperm.slane %v1735_v6, 1 }
 0x2a7   :  { %vm1737_vm1 = vcmp.eq.s32.totalorder %v1736_v9, 1  ;;  %vm1750_vm2 = vcmp.eq.s32.totalorder %v1749_v16, 1 }
 0x2a8   :  { %1457 = vmatmul.bf16.vlgmr.msra.gmra.mxu1 %v1063_v7 }
 0x2a9   :  { %1714 = vmatpush.bf16.msrb.mxu1 %v2742_v24  ;;  %v1727_v24 = vrot.slane %v1725_v2, 4 }
 0x2ab   :  { %v1728_v25 = vadd.f32 %v1727_v24, %v1725_v2 }
 0x2ad   :  { %1715 = vmatpush.bf16.msrb.mxu1 %v2741_v26  ;;  %v1729_v26 = vrot.slane %v1728_v25, 2 }
 0x2af   :  { %v1730_v29 = vadd.f32 %v1729_v26, %v1728_v25 }
 0x2b1   :  { %1716 = vmatpush.bf16.msrb.mxu1 %v2740_v27  ;;  %v1724_v27 = vld [vmem:[%s3126_s13] sm:$0x1] }
 0x2b2   :  { %vm1726_vm3 = vcmp.gt.f32.partialorder %v1724_v27, 0.5 }
 0x2b5   :  { %1717 = vmatpush.bf16.msrb.mxu1 %v2739_v28 }
 0x30f   :  { %v1444_v33 = vpop.f32.mrf.mxu0 }
 0x315   :  { %v1402_v30 = vpop.f32.mrf.mxu1  ;;  %v1416_v31 = vpop.f32.mrf.mxu2 }
 0x316   :  { %v1403_v34 = vadd.f32 %v1402_v30, %v1131_v32  ;;  %v1731_v30 = vrot.slane %v1730_v29, 1 }
 0x317   :  { %v1446_v46 = vpop.f32.mrf.mxu0 }
 0x318   :  { %v1417_v39 = vadd.f32 %v1416_v31, %v1403_v34  ;;  %v1744_v31 = vperm.slane %v1725_v2, 0 }
 0x31a   :  { %v1477_v43 = vmax.f32 %v1417_v39, 0.0 }
 0x31b   :  { %v1430_v35 = vpop.f32.mrf.mxu3 }
 0x31c   :  { %v1431_v41 = vadd.f32 %v1430_v35, %v1132_v36  ;;  %v1732_v35 = vadd.f32 %v1731_v30, %v1730_v29 }
 0x31d   :  { %v1404_v37 = vpop.f32.mrf.mxu1  ;;  %v1418_v38 = vpop.f32.mrf.mxu2 }
 0x31e   :  { %v1405_v40 = vadd.f32 %v1404_v37, %v1131_v32  ;;  %v1445_v47 = vadd.f32 %v1444_v33, %v1431_v41  ;;  %v1757_v32 = vperm.slane %v1725_v2, 1  ;;  %v1770_v33 = vsel %vm1726_vm3, 1, %v2943_v5 }
 0x31f   :  { %v1771_v37 = vperm.slane %v1770_v33, 0  ;;  %vm1733_vm4 = vcmp.gt.f32.partialorder %v1732_v35, 0.5 }
 0x320   :  { %v1419_v42 = vadd.f32 %v1418_v38, %v1405_v40  ;;  %v1478_v54 = vmax.f32 %v1445_v47, 0.0 }
 0x321   :  { %vm3085_vm5 = vcmp.eq.s32.totalorder %v1771_v37, 1 }
 0x322   :  { %v1480_v44 = vmax.f32 %v1419_v42, 0.0 }
 0x323   :  { %v1432_v45 = vpop.f32.mrf.mxu3 }
 0x324   :  { %v1483_v48 = vpack.c.bf16 %v1480_v44, %v1477_v43  ;;  %v1433_v49 = vadd.f32 %v1432_v45, %v1132_v36 }
 0x325   :  { %v1458_v50 = vpop.f32.mrf.mxu1  ;;  %v1472_v51 = vpop.f32.mrf.mxu2 }
 0x326   :  { %v1447_v52 = vadd.f32 %v1446_v46, %v1433_v49  ;;  %1690 = vmatmul.bf16.vlgmr.msra.gmra.mxu3 %v1483_v48  ;;  %v1459_v57 = vadd.f32 %v1458_v50, %v1133_v53 }
 0x328   :  { %v1481_v55 = vmax.f32 %v1447_v52, 0.0  ;;  %v1473_v59 = vadd.f32 %v1472_v51, %v1459_v57 }
 0x32a   :  { %v1484_v56 = vpack.c.bf16 %v1481_v55, %v1478_v54  ;;  %v1479_v63 = vmax.f32 %v1473_v59, 0.0 }
 0x32c   :  { %1704 = vmatmul.bf16.vlgmr.msrb.gmra.mxu0 %v1484_v56 }
 0x32d   :  { %v1460_v58 = vpop.f32.mrf.mxu1  ;;  %v1474_v61 = vpop.f32.mrf.mxu2 }
 0x32e   :  { %v1461_v60 = vadd.f32 %v1460_v58, %v1133_v53 }
 0x330   :  { %v1475_v62 = vadd.f32 %v1474_v61, %v1461_v60 }
 0x332   :  { %v1482_v0 = vmax.f32 %v1475_v62, 0.0 }
 0x334   :  { %v1485_v1 = vpack.c.bf16 %v1482_v0, %v1479_v63 }
 0x336   :  { %1718 = vmatmul.bf16.vlgmr.msrb.gmra.mxu1 %v1485_v1 }
 0x3a9   :  { %v1691_v3 = vpop.f32.mrf.mxu3  ;;  %v1705_v8 = vpop.f32.mrf.mxu0 }
 0x3aa   :  { %v1692_v7 = vadd.f32 %v2766_v4, %v1691_v3 }
 0x3ac   :  { %v1706_v10 = vadd.f32 %v1705_v8, %v1692_v7 }
 0x3b1   :  { %v1693_v11 = vpop.f32.mrf.mxu3  ;;  %v1707_v17 = vpop.f32.mrf.mxu0 }
 0x3b2   :  { %v1694_v14 = vadd.f32 %v2766_v4, %v1693_v11 }
 0x3b3   :  { %v1719_v12 = vpop.f32.mrf.mxu1 }
 0x3b4   :  { %v3074_v13 = vadd.f32 %v1719_v12, %v1706_v10  ;;  %v1708_v18 = vadd.f32 %v1707_v17, %v1694_v14 }
 0x3b6   :  { %v1738_v15 = vsel %vm1737_vm1, %v3074_v13, -1e+30  ;;  %v1751_v22 = vsel %vm1750_vm2, %v3074_v13, -1e+30  ;;  %v1762_v43 = vsub.f32 0.0, %v3074_v13 }
 0x3b7   :  { %1740 = vmax.xlane.f32.xlu0 %v1738_v15 }
 0x3bb   :  { %v1721_v19 = vpop.f32.mrf.mxu1 }
 0x3bc   :  { %v3077_v20 = vadd.f32 %v1721_v19, %v1708_v18 }
 0x3be   :  { %v1739_v21 = vsel %vm1737_vm1, %v3077_v20, -1e+30  ;;  %v1752_v23 = vsel %vm1750_vm2, %v3077_v20, -1e+30  ;;  %v1763_v53 = vsub.f32 0.0, %v3077_v20 }
 0x3bf   :  { %1742 = vmax.xlane.f32.xlu1 %v1739_v21  ;;  %1753 = vmax.xlane.f32.xlu0 %v1751_v22 }
 0x3c7   :  { %1755 = vmax.xlane.f32.xlu1 %v1752_v23 }
 0x42a   :  { %v1741_v28 = vpop.xlane.xlu0 %1740 }
 0x42b   :  { %v1745_v38 = vmul.f32 %v1744_v31, %v1741_v28 }
 0x432   :  { %v1743_v34 = vpop.xlane.xlu1 %1742  ;;  %v1754_v36 = vpop.xlane.xlu0 %1753 }
 0x433   :  { %v1758_v39 = vmul.f32 %v1757_v32, %v1754_v36  ;;  %v1746_v47 = vmul.f32 %v1744_v31, %v1743_v34 }
 0x435   :  { %v1760_v40 = vadd.f32 %v1758_v39, %v1745_v38 }
 0x437   :  { %v1764_v42 = vsub.f32 %v3074_v13, %v1760_v40 }
 0x439   :  { %v1768_v44 = vsel %vm1733_vm4, %v1764_v42, 0.0 }
 0x43a   :  { %v1773_v45 = vsel %vm3085_vm5, %v1762_v43, %v1768_v44  ;;  %v1756_v46 = vpop.xlane.xlu1 %1755 }
 0x43b   :  { %v1775_v48 = vmin.f32 %v1773_v45, 80.0  ;;  %v1759_v49 = vmul.f32 %v1757_v32, %v1756_v46 }
 0x43d   :  { %v1777_v50 = vmul.f32 1.442695, %v1775_v48  ;;  %v1761_v51 = vadd.f32 %v1759_v49, %v1746_v47 }
 0x43f   :  { %2767 = vpow2.f32 %v1777_v50  ;;  %v1765_v52 = vsub.f32 %v3077_v20, %v1761_v51 }
 0x441   :  { %v1769_v54 = vsel %vm1733_vm4, %v1765_v52, 0.0 }
 0x442   :  { %v1774_v55 = vsel %vm3085_vm5, %v1763_v53, %v1769_v54 }
 0x443   :  { %v1776_v56 = vmin.f32 %v1774_v55, 80.0 }
 0x445   :  { %v2768_v57 = vpop.eup %2767  ;;  %v1779_v58 = vmul.f32 1.442695, %v1776_v56 }
 0x446   :  { %1797 = vmatmul.f32.vlgmr.msrb.gmra.mxu2 %v2768_v57  ;;  %v1834_v62 = vadd.f32 1.0, %v2768_v57 }
 0x447   :  { %2769 = vpow2.f32 %v1779_v58 }
 0x448   :  { %2771 = vrcp.f32 %v1834_v62 }
 0x44d   :  { %v2770_v59 = vpop.eup %2769 }
 0x44e   :  { %1800 = vmatmul.f32.gmra.mxu2 %v2770_v59  ;;  %v1835_v0 = vadd.f32 1.0, %v2770_v59  ;;  %v2772_v1 = vpop.eup %2771 }
 0x44f   :  { %v1838_v5 = vsel %vm3085_vm5, %v2772_v1, %v3074_v13 }
 0x4c9   :  { %v1798_v60 = vpop.f32.mrf.mxu2 }
 0x4ca   :  { %2568 = vmatmul.msk.f32.vlgmr.msrb.gmra.mxu3 %vm1804_vm6, %v1798_v60 }
 0x4d1   :  { %v1801_v61 = vpop.f32.mrf.mxu2 }
 0x4d2   :  { %2569 = vmatmul.msk.f32.gmra.mxu3 %vm1804_vm6, %v1801_v61 }
 0x54d   :  { %v1828_v63 = vpop.f32.mrf.mxu3 }
 0x54e   :  { %2773 = vrcp.f32 %v1828_v63 }
 0x54f   :  { %2775 = vrcp.f32 %v1835_v0 }
 0x554   :  { %v2774_v2 = vpop.eup %2773 }
 0x555   :  { %v1842_v3 = vmul.f32 %v2774_v2, %v2768_v57  ;;  %v1831_v4 = vpop.f32.mrf.mxu3  ;;  %v2776_v7 = vpop.eup %2775 }
 0x556   :  { %2777 = vrcp.f32 %v1831_v4  ;;  %v1839_v10 = vsel %vm3085_vm5, %v2776_v7, %v3077_v20 }
 0x557   :  { %v1844_v6 = vsel %vm1733_vm4, %v1842_v3, %v1838_v5 }
 0x558   :  { %1846 = vst [vmem:[%s3128_s15] sm:$0xff] %v1844_v6 }
 0x55c   :  { %v2778_v8 = vpop.eup %2777 }
 0x55d   :  { %v1843_v9 = vmul.f32 %v2778_v8, %v2770_v59 }
 0x55f   :  { %v1845_v11 = vsel %vm1733_vm4, %v1843_v9, %v1839_v10 }
 0x560   :  { %1847 = vst [vmem:[%s3128_s15 + $0x8] sm:$0xff] %v1845_v11 }
 0x561   :  { %1856 = vsyncpa [#allocation3], 1 }
 0x562   :  { %1857 = vsyncpa [#allocation5], 1 }
 0x563   :  { %1858 = vsyncpa [#allocation8], 1 }
 0x564   :  { %1859 = vsyncpa [#allocation11], 1 }

</bundles_post_ra>
